<compile_context>
chip_gen: v7x
topology: tpu7x:2x2x1
jax: 0.10.0
libtpu: 0.0.40
codegen_flags: <defaults>
</compile_context>

<pallas_src>
import jax
import jax.numpy as jnp
import numpy as np
from jax import lax
from jax.experimental import pallas as pl
from jax.experimental.pallas import tpu as pltpu


def attention_rnn_kernel(x_ref, wih_ref, whh_ref, b_ref, watt_ref,
                         wfc_ref, bfc_ref, out_ref):
    T, TB, D = x_ref.shape          # time, batch-tile, input features
    H = whh_ref.shape[0]            # hidden size

    # ---- hoisted input projection: one (T*TB, D) x (D, 4H) MXU call, bias folded in ----
    xf = x_ref[...].reshape(T * TB, D)
    gx = jnp.dot(xf, wih_ref[...], preferred_element_type=jnp.float32) + b_ref[...]
    gx = gx.reshape(T, TB, 4 * H)                             # (T, TB, 4H)

    whh = whh_ref[...]                                        # (H, 4H)
    # Broadcast hoisted out of the loop (JAX does not CSE broadcast_in_dim).
    watt_b = jnp.broadcast_to(watt_ref[...], (TB, H))         # (TB, H)

    # LSTM state and online-softmax accumulators, carried as values (stay in vregs).
    h = jnp.zeros((TB, H), jnp.float32)
    c = jnp.zeros((TB, H), jnp.float32)
    m = jnp.full((TB, 1), -jnp.inf, jnp.float32)              # running max of attention logits
    l = jnp.zeros((TB, 1), jnp.float32)                       # running softmax denominator
    acc = jnp.zeros((TB, H), jnp.float32)                     # running softmax-weighted sum

    # Fully unrolled recurrence (T static & small): equivalent to fori_loop(..., unroll=True);
    # the scheduler can overlap VPU/EUP elementwise with the MXU h@Whh of neighbouring steps.
    for t in range(T):
        gates = gx[t] + jnp.dot(h, whh, preferred_element_type=jnp.float32)   # (TB, 4H)
        # Gate columns are pre-permuted in the wrapper to [i, f, o, g]:
        sig = jax.nn.sigmoid(gates[:, :3 * H])                # one full-width EUP region
        g = jnp.tanh(gates[:, 3 * H:])                        # one full-width EUP region
        i_g = sig[:, 0:H]
        f_g = sig[:, H:2 * H]
        o_g = sig[:, 2 * H:3 * H]
        c = f_g * c + i_g * g
        h = o_g * jnp.tanh(c)
        r = jnp.maximum(h, 0.0)                               # ReLU(LSTM output)

        # Fused attention logit + online softmax over time (no (T,B,H) scratch).
        # b_att is omitted: softmax over time is invariant to a constant shift of the logits.
        logit = jnp.sum(r * watt_b, axis=-1, keepdims=True)   # (TB, 1), XLU reduce
        m_new = jnp.maximum(m, logit)
        alpha = jnp.exp(m - m_new)
        p = jnp.exp(logit - m_new)
        l = alpha * l + p
        acc = alpha * acc + p * r
        m = m_new

    # Softmax normalization: EUP approx reciprocal + one Newton step (no VPU divide).
    inv_l = pl.reciprocal(l, approx=True)
    inv_l = inv_l * (2.0 - l * inv_l)
    weighted = acc * inv_l                                    # (TB, H)

    action = jnp.dot(weighted, wfc_ref[...],
                     preferred_element_type=jnp.float32) + bfc_ref[...]   # (TB, O_pad)
    out_ref[...] = jnp.clip(action, -0.003, 0.003)            # lane-dense, unmasked store


def attention_rnn_forward(state, params, *, batch_tile=8):
    B, T, A, F = state.shape
    D = A * F
    H = params["w_hh"].shape[1]
    O = params["w_fc"].shape[0]

    TB = batch_tile
    B_pad = ((B + TB - 1) // TB) * TB                # pad batch to the tile multiple
    O_pad = ((O + 127) // 128) * 128                 # pad FC output to lane-dense width
    nb = B_pad // TB

    # time-major (T, B_pad, D), zero-padded batch rows (sliced off at the end)
    x = state.reshape(B, T, D).astype(jnp.float32)
    x = jnp.pad(x, ((0, B_pad - B), (0, 0), (0, 0)))
    x = jnp.transpose(x, (1, 0, 2))                  # (T, B_pad, D)

    # Reorder PyTorch gate blocks [i, f, g, o] -> [i, f, o, g] so the kernel can run one
    # sigmoid over the first 3H columns and one tanh over the last H columns.
    def permute_gates(w):
        return jnp.concatenate([w[0:H], w[H:2 * H], w[3 * H:4 * H], w[2 * H:3 * H]], axis=0)

    wih_t = permute_gates(params["w_ih"]).T.astype(jnp.float32)               # (D, 4H)
    whh_t = permute_gates(params["w_hh"]).T.astype(jnp.float32)               # (H, 4H)
    bias = permute_gates(params["b_ih"] + params["b_hh"]).reshape(1, 4 * H).astype(jnp.float32)
    watt = params["w_att"].reshape(1, H).astype(jnp.float32)
    wfc_t = jnp.zeros((H, O_pad), jnp.float32).at[:, :O].set(params["w_fc"].T)
    bfc = jnp.zeros((1, O_pad), jnp.float32).at[:, :O].set(params["b_fc"].reshape(1, O))

    grid_spec = pltpu.PrefetchScalarGridSpec(
        num_scalar_prefetch=0,
        grid=(nb,),
        in_specs=[
            pl.BlockSpec((T, TB, D), lambda b: (0, b, 0)),     # x: tiled over batch
            pl.BlockSpec((D, 4 * H), lambda b: (0, 0)),        # weights: constant block index,
            pl.BlockSpec((H, 4 * H), lambda b: (0, 0)),        # fetched once, not re-DMA'd
            pl.BlockSpec((1, 4 * H), lambda b: (0, 0)),
            pl.BlockSpec((1, H), lambda b: (0, 0)),
            pl.BlockSpec((H, O_pad), lambda b: (0, 0)),
            pl.BlockSpec((1, O_pad), lambda b: (0, 0)),
        ],
        out_specs=pl.BlockSpec((TB, O_pad), lambda b: (b, 0)),
    )

    out = pl.pallas_call(
        attention_rnn_kernel,
        out_shape=jax.ShapeDtypeStruct((B_pad, O_pad), jnp.float32),
        grid_spec=grid_spec,
        compiler_params=pltpu.CompilerParams(
            dimension_semantics=("parallel",)),                # batch tiles are independent
    )(x, wih_t, whh_t, bias, watt, wfc_t, bfc)

    return out[:B, :O]


def reference_forward(state, params):
    """Pure-JAX reference mirroring the PyTorch forward (original gate order, with b_att)."""
    B, T, A, F = state.shape
    x = state.reshape(B, T, A * F)
    H = params["w_hh"].shape[1]
    w_ih, w_hh = params["w_ih"], params["w_hh"]
    b = params["b_ih"] + params["b_hh"]
    hp = lax.Precision.HIGHEST

    def step(carry, x_t):
        h, c = carry
        gates = (jnp.dot(x_t, w_ih.T, precision=hp)
                 + jnp.dot(h, w_hh.T, precision=hp) + b)
        i, f, g, o = jnp.split(gates, 4, axis=-1)
        c = jax.nn.sigmoid(f) * c + jax.nn.sigmoid(i) * jnp.tanh(g)
        h = jax.nn.sigmoid(o) * jnp.tanh(c)
        return (h, c), h

    h0 = jnp.zeros((B, H), jnp.float32)
    c0 = jnp.zeros((B, H), jnp.float32)
    _, hs = lax.scan(step, (h0, c0), jnp.transpose(x, (1, 0, 2)))
    rnn_out = jax.nn.relu(jnp.transpose(hs, (1, 0, 2)))                      # (B, T, H)
    logits = jnp.einsum("bth,oh->bto", rnn_out, params["w_att"],
                        precision=hp) + params["b_att"]                       # (B, T, 1)
    attn = jax.nn.softmax(logits, axis=1)
    weighted = jnp.sum(attn * rnn_out, axis=1)                                # (B, H)
    action = jnp.dot(weighted, params["w_fc"].T, precision=hp) + params["b_fc"]
    return jnp.clip(action, -0.003, 0.003)


def init_params(key, input_size, hidden_size, output_size):
    ks = jax.random.split(key, 8)
    H, D, O = hidden_size, input_size, output_size

    def xavier_uniform(k, shape, gain=1.0):
        fan_out, fan_in = shape
        a = gain * np.sqrt(6.0 / (fan_in + fan_out))
        return jax.random.uniform(k, shape, jnp.float32, -a, a)

    # xavier_uniform_(weight_ih_l0, gain=0.01)
    w_ih = xavier_uniform(ks[0], (4 * H, D), gain=0.01)
    # orthogonal_(weight_hh_l0, gain=0.01)
    q, _ = jnp.linalg.qr(jax.random.normal(ks[1], (4 * H, H), jnp.float32))
    w_hh = 0.01 * q
    k_lstm = 1.0 / np.sqrt(H)
    b_ih = jax.random.uniform(ks[2], (4 * H,), jnp.float32, -k_lstm, k_lstm)
    b_hh = jax.random.uniform(ks[3], (4 * H,), jnp.float32, -k_lstm, k_lstm)
    # attention = Linear(H, 1), default init
    w_att = jax.random.uniform(ks[4], (1, H), jnp.float32, -k_lstm, k_lstm)
    b_att = jax.random.uniform(ks[5], (1,), jnp.float32, -k_lstm, k_lstm)
    # fc = Linear(H, O): weight xavier_uniform, bias default
    w_fc = xavier_uniform(ks[6], (O, H))
    b_fc = jax.random.uniform(ks[7], (O,), jnp.float32, -k_lstm, k_lstm)
    return dict(w_ih=w_ih, w_hh=w_hh, b_ih=b_ih, b_hh=b_hh,
                w_att=w_att, b_att=b_att, w_fc=w_fc, b_fc=b_fc)


if __name__ == "__main__":
    # Small shapes consistent with the module: state (B, lookback, num_assets, num_factors).
    # batch=12 (padded to 16 -> 2 batch tiles, exercising the parallel grid), hidden=64
    # (the module spec's hidden_size, also fills the 256-wide MXU lanes with 4H=256).
    batch, lookback, num_assets, num_factors = 12, 8, 16, 4
    hidden = 64
    input_size = num_assets * num_factors    # 64
    output_size = num_assets                 # 16

    key = jax.random.PRNGKey(0)
    k_param, k_state = jax.random.split(key)
    params = init_params(k_param, input_size, hidden, output_size)
    state = jax.random.normal(k_state, (batch, lookback, num_assets, num_factors),
                              dtype=jnp.float32)

    out = jax.block_until_ready(attention_rnn_forward(state, params))
    ref = reference_forward(state, params)

    # Deliberate tolerance: in-kernel MXU dots use default f32 precision (reference uses
    # HIGHEST), the softmax reciprocal is approx + one Newton refinement, and the attention
    # bias is dropped inside the kernel (exact up to fp rounding via softmax shift invariance);
    # outputs are clamped to [-3e-3, 3e-3] so 1e-4 remains a meaningful check.
    np.testing.assert_allclose(np.asarray(out), np.asarray(ref), atol=1e-4, rtol=1e-3)

    print("KERNEL_OK")
</pallas_src>

<mosaic_0001>
module attributes {stable_mosaic.version = 11 : i64} {
  func.func @attention_rnn_kernel(%arg0: i32, %arg1: memref<8x8x64xf32, #tpu.memory_space<vmem>>, %arg2: memref<64x256xf32, #tpu.memory_space<vmem>>, %arg3: memref<64x256xf32, #tpu.memory_space<vmem>>, %arg4: memref<1x256xf32, #tpu.memory_space<vmem>>, %arg5: memref<1x64xf32, #tpu.memory_space<vmem>>, %arg6: memref<64x128xf32, #tpu.memory_space<vmem>>, %arg7: memref<1x128xf32, #tpu.memory_space<vmem>>, %arg8: memref<8x128xf32, #tpu.memory_space<vmem>>) attributes {dimension_semantics = [#tpu.dimension_semantics<parallel>], iteration_bounds = array<i64: 2>, scalar_prefetch = 0 : i64, scratch_operands = 0 : i64, tpu.core_type = #tpu.core_type<tc>, window_params = [{transform_indices = @transform_0, window_bounds = array<i64: 8, 8, 64>}, {pipeline_mode = #tpu.pipeline_mode<synchronous>, transform_indices = @transform_1, window_bounds = array<i64: 64, 256>}, {pipeline_mode = #tpu.pipeline_mode<synchronous>, transform_indices = @transform_2, window_bounds = array<i64: 64, 256>}, {pipeline_mode = #tpu.pipeline_mode<synchronous>, transform_indices = @transform_3, window_bounds = array<i64: 1, 256>}, {pipeline_mode = #tpu.pipeline_mode<synchronous>, transform_indices = @transform_4, window_bounds = array<i64: 1, 64>}, {pipeline_mode = #tpu.pipeline_mode<synchronous>, transform_indices = @transform_5, window_bounds = array<i64: 64, 128>}, {pipeline_mode = #tpu.pipeline_mode<synchronous>, transform_indices = @transform_6, window_bounds = array<i64: 1, 128>}, {transform_indices = @transform_7, window_bounds = array<i64: 8, 128>}]} {
    %c0 = arith.constant 0 : index
    %c0_0 = arith.constant 0 : index
    %c0_1 = arith.constant 0 : index
    %0 = vector.load %arg1[%c0, %c0_0, %c0_1] : memref<8x8x64xf32, #tpu.memory_space<vmem>>, vector<8x8x64xf32>
    %1 = vector.shape_cast %0 : vector<8x8x64xf32> to vector<64x64xf32>
    %c0_2 = arith.constant 0 : index
    %c0_3 = arith.constant 0 : index
    %2 = vector.load %arg2[%c0_2, %c0_3] : memref<64x256xf32, #tpu.memory_space<vmem>>, vector<64x256xf32>
    %cst = arith.constant dense<0.000000e+00> : vector<64x256xf32>
    %3 = tpu.matmul %1, %2, %cst {dimension_numbers = #tpu.dot_dimension_numbers<[1], [0], [0], [1], [0, 0, 1, 1], [], []>} : vector<64x64xf32>, vector<64x256xf32>, vector<64x256xf32> -> vector<64x256xf32>
    %c0_4 = arith.constant 0 : index
    %c0_5 = arith.constant 0 : index
    %4 = vector.load %arg4[%c0_4, %c0_5] : memref<1x256xf32, #tpu.memory_space<vmem>>, vector<1x256xf32>
    %5 = vector.broadcast %4 : vector<1x256xf32> to vector<64x256xf32>
    %6 = arith.addf %3, %5 : vector<64x256xf32>
    %7 = vector.shape_cast %6 : vector<64x256xf32> to vector<8x8x256xf32>
    %c0_6 = arith.constant 0 : index
    %c0_7 = arith.constant 0 : index
    %8 = vector.load %arg3[%c0_6, %c0_7] : memref<64x256xf32, #tpu.memory_space<vmem>>, vector<64x256xf32>
    %c0_8 = arith.constant 0 : index
    %c0_9 = arith.constant 0 : index
    %9 = vector.load %arg5[%c0_8, %c0_9] : memref<1x64xf32, #tpu.memory_space<vmem>>, vector<1x64xf32>
    %10 = vector.shape_cast %9 : vector<1x64xf32> to vector<1x64xf32>
    %11 = vector.broadcast %10 : vector<1x64xf32> to vector<8x64xf32>
    %cst_10 = arith.constant 0.000000e+00 : f32
    %12 = vector.broadcast %cst_10 : f32 to vector<8x64xf32>
    %cst_11 = arith.constant 0.000000e+00 : f32
    %13 = vector.broadcast %cst_11 : f32 to vector<8x64xf32>
    %cst_12 = arith.constant 0xFF800000 : f32
    %14 = vector.broadcast %cst_12 : f32 to vector<8x1xf32>
    %cst_13 = arith.constant 0.000000e+00 : f32
    %15 = vector.broadcast %cst_13 : f32 to vector<8x1xf32>
    %cst_14 = arith.constant 0.000000e+00 : f32
    %16 = vector.broadcast %cst_14 : f32 to vector<8x64xf32>
    %17 = vector.extract_strided_slice %7 {offsets = [0, 0, 0], sizes = [1, 8, 256], strides = [1, 1, 1]} : vector<8x8x256xf32> to vector<1x8x256xf32>
    %18 = vector.shape_cast %17 : vector<1x8x256xf32> to vector<8x256xf32>
    %cst_15 = arith.constant dense<0.000000e+00> : vector<8x256xf32>
    %19 = tpu.matmul %12, %8, %cst_15 {dimension_numbers = #tpu.dot_dimension_numbers<[1], [0], [0], [1], [0, 0, 1, 1], [], []>} : vector<8x64xf32>, vector<64x256xf32>, vector<8x256xf32> -> vector<8x256xf32>
    %20 = arith.addf %18, %19 : vector<8x256xf32>
    %21 = vector.extract_strided_slice %20 {offsets = [0, 0], sizes = [8, 192], strides = [1, 1]} : vector<8x256xf32> to vector<8x192xf32>
    %22 = arith.negf %21 : vector<8x192xf32>
    %23 = math.exp %22 : vector<8x192xf32>
    %cst_16 = arith.constant 1.000000e+00 : f32
    %24 = vector.broadcast %cst_16 : f32 to vector<8x192xf32>
    %25 = arith.addf %24, %23 : vector<8x192xf32>
    %26 = arith.divf %24, %25 : vector<8x192xf32>
    %27 = vector.extract_strided_slice %20 {offsets = [0, 192], sizes = [8, 64], strides = [1, 1]} : vector<8x256xf32> to vector<8x64xf32>
    %28 = math.tanh %27 : vector<8x64xf32>
    %29 = vector.extract_strided_slice %26 {offsets = [0, 0], sizes = [8, 64], strides = [1, 1]} : vector<8x192xf32> to vector<8x64xf32>
    %30 = vector.extract_strided_slice %26 {offsets = [0, 64], sizes = [8, 64], strides = [1, 1]} : vector<8x192xf32> to vector<8x64xf32>
    %31 = vector.extract_strided_slice %26 {offsets = [0, 128], sizes = [8, 64], strides = [1, 1]} : vector<8x192xf32> to vector<8x64xf32>
    %32 = arith.mulf %30, %13 : vector<8x64xf32>
    %33 = arith.mulf %29, %28 : vector<8x64xf32>
    %34 = arith.addf %32, %33 : vector<8x64xf32>
    %35 = math.tanh %34 : vector<8x64xf32>
    %36 = arith.mulf %31, %35 : vector<8x64xf32>
    %cst_17 = arith.constant 0.000000e+00 : f32
    %37 = vector.broadcast %cst_17 : f32 to vector<8x64xf32>
    %38 = arith.maximumf %36, %37 : vector<8x64xf32>
    %39 = arith.mulf %38, %11 : vector<8x64xf32>
    %cst_18 = arith.constant dense<0.000000e+00> : vector<8xf32>
    %40 = vector.multi_reduction <add>, %39, %cst_18 [1] : vector<8x64xf32> to vector<8xf32>
    %41 = vector.shape_cast %40 : vector<8xf32> to vector<8x1xf32>
    %42 = arith.maximumf %14, %41 : vector<8x1xf32>
    %43 = arith.subf %14, %42 : vector<8x1xf32>
    %44 = math.exp %43 : vector<8x1xf32>
    %45 = arith.subf %41, %42 : vector<8x1xf32>
    %46 = math.exp %45 : vector<8x1xf32>
    %47 = arith.mulf %44, %15 : vector<8x1xf32>
    %48 = arith.addf %47, %46 : vector<8x1xf32>
    %49 = vector.broadcast %44 : vector<8x1xf32> to vector<8x64xf32>
    %50 = arith.mulf %49, %16 : vector<8x64xf32>
    %51 = vector.broadcast %46 : vector<8x1xf32> to vector<8x64xf32>
    %52 = arith.mulf %51, %38 : vector<8x64xf32>
    %53 = arith.addf %50, %52 : vector<8x64xf32>
    %54 = vector.extract_strided_slice %7 {offsets = [1, 0, 0], sizes = [1, 8, 256], strides = [1, 1, 1]} : vector<8x8x256xf32> to vector<1x8x256xf32>
    %55 = vector.shape_cast %54 : vector<1x8x256xf32> to vector<8x256xf32>
    %cst_19 = arith.constant dense<0.000000e+00> : vector<8x256xf32>
    %56 = tpu.matmul %36, %8, %cst_19 {dimension_numbers = #tpu.dot_dimension_numbers<[1], [0], [0], [1], [0, 0, 1, 1], [], []>} : vector<8x64xf32>, vector<64x256xf32>, vector<8x256xf32> -> vector<8x256xf32>
    %57 = arith.addf %55, %56 : vector<8x256xf32>
    %58 = vector.extract_strided_slice %57 {offsets = [0, 0], sizes = [8, 192], strides = [1, 1]} : vector<8x256xf32> to vector<8x192xf32>
    %59 = arith.negf %58 : vector<8x192xf32>
    %60 = math.exp %59 : vector<8x192xf32>
    %cst_20 = arith.constant 1.000000e+00 : f32
    %61 = vector.broadcast %cst_20 : f32 to vector<8x192xf32>
    %62 = arith.addf %61, %60 : vector<8x192xf32>
    %63 = arith.divf %61, %62 : vector<8x192xf32>
    %64 = vector.extract_strided_slice %57 {offsets = [0, 192], sizes = [8, 64], strides = [1, 1]} : vector<8x256xf32> to vector<8x64xf32>
    %65 = math.tanh %64 : vector<8x64xf32>
    %66 = vector.extract_strided_slice %63 {offsets = [0, 0], sizes = [8, 64], strides = [1, 1]} : vector<8x192xf32> to vector<8x64xf32>
    %67 = vector.extract_strided_slice %63 {offsets = [0, 64], sizes = [8, 64], strides = [1, 1]} : vector<8x192xf32> to vector<8x64xf32>
    %68 = vector.extract_strided_slice %63 {offsets = [0, 128], sizes = [8, 64], strides = [1, 1]} : vector<8x192xf32> to vector<8x64xf32>
    %69 = arith.mulf %67, %34 : vector<8x64xf32>
    %70 = arith.mulf %66, %65 : vector<8x64xf32>
    %71 = arith.addf %69, %70 : vector<8x64xf32>
    %72 = math.tanh %71 : vector<8x64xf32>
    %73 = arith.mulf %68, %72 : vector<8x64xf32>
    %cst_21 = arith.constant 0.000000e+00 : f32
    %74 = vector.broadcast %cst_21 : f32 to vector<8x64xf32>
    %75 = arith.maximumf %73, %74 : vector<8x64xf32>
    %76 = arith.mulf %75, %11 : vector<8x64xf32>
    %cst_22 = arith.constant dense<0.000000e+00> : vector<8xf32>
    %77 = vector.multi_reduction <add>, %76, %cst_22 [1] : vector<8x64xf32> to vector<8xf32>
    %78 = vector.shape_cast %77 : vector<8xf32> to vector<8x1xf32>
    %79 = arith.maximumf %42, %78 : vector<8x1xf32>
    %80 = arith.subf %42, %79 : vector<8x1xf32>
    %81 = math.exp %80 : vector<8x1xf32>
    %82 = arith.subf %78, %79 : vector<8x1xf32>
    %83 = math.exp %82 : vector<8x1xf32>
    %84 = arith.mulf %81, %48 : vector<8x1xf32>
    %85 = arith.addf %84, %83 : vector<8x1xf32>
    %86 = vector.broadcast %81 : vector<8x1xf32> to vector<8x64xf32>
    %87 = arith.mulf %86, %53 : vector<8x64xf32>
    %88 = vector.broadcast %83 : vector<8x1xf32> to vector<8x64xf32>
    %89 = arith.mulf %88, %75 : vector<8x64xf32>
    %90 = arith.addf %87, %89 : vector<8x64xf32>
    %91 = vector.extract_strided_slice %7 {offsets = [2, 0, 0], sizes = [1, 8, 256], strides = [1, 1, 1]} : vector<8x8x256xf32> to vector<1x8x256xf32>
    %92 = vector.shape_cast %91 : vector<1x8x256xf32> to vector<8x256xf32>
    %cst_23 = arith.constant dense<0.000000e+00> : vector<8x256xf32>
    %93 = tpu.matmul %73, %8, %cst_23 {dimension_numbers = #tpu.dot_dimension_numbers<[1], [0], [0], [1], [0, 0, 1, 1], [], []>} : vector<8x64xf32>, vector<64x256xf32>, vector<8x256xf32> -> vector<8x256xf32>
    %94 = arith.addf %92, %93 : vector<8x256xf32>
    %95 = vector.extract_strided_slice %94 {offsets = [0, 0], sizes = [8, 192], strides = [1, 1]} : vector<8x256xf32> to vector<8x192xf32>
    %96 = arith.negf %95 : vector<8x192xf32>
    %97 = math.exp %96 : vector<8x192xf32>
    %cst_24 = arith.constant 1.000000e+00 : f32
    %98 = vector.broadcast %cst_24 : f32 to vector<8x192xf32>
    %99 = arith.addf %98, %97 : vector<8x192xf32>
    %100 = arith.divf %98, %99 : vector<8x192xf32>
    %101 = vector.extract_strided_slice %94 {offsets = [0, 192], sizes = [8, 64], strides = [1, 1]} : vector<8x256xf32> to vector<8x64xf32>
    %102 = math.tanh %101 : vector<8x64xf32>
    %103 = vector.extract_strided_slice %100 {offsets = [0, 0], sizes = [8, 64], strides = [1, 1]} : vector<8x192xf32> to vector<8x64xf32>
    %104 = vector.extract_strided_slice %100 {offsets = [0, 64], sizes = [8, 64], strides = [1, 1]} : vector<8x192xf32> to vector<8x64xf32>
    %105 = vector.extract_strided_slice %100 {offsets = [0, 128], sizes = [8, 64], strides = [1, 1]} : vector<8x192xf32> to vector<8x64xf32>
    %106 = arith.mulf %104, %71 : vector<8x64xf32>
    %107 = arith.mulf %103, %102 : vector<8x64xf32>
    %108 = arith.addf %106, %107 : vector<8x64xf32>
    %109 = math.tanh %108 : vector<8x64xf32>
    %110 = arith.mulf %105, %109 : vector<8x64xf32>
    %cst_25 = arith.constant 0.000000e+00 : f32
    %111 = vector.broadcast %cst_25 : f32 to vector<8x64xf32>
    %112 = arith.maximumf %110, %111 : vector<8x64xf32>
    %113 = arith.mulf %112, %11 : vector<8x64xf32>
    %cst_26 = arith.constant dense<0.000000e+00> : vector<8xf32>
    %114 = vector.multi_reduction <add>, %113, %cst_26 [1] : vector<8x64xf32> to vector<8xf32>
    %115 = vector.shape_cast %114 : vector<8xf32> to vector<8x1xf32>
    %116 = arith.maximumf %79, %115 : vector<8x1xf32>
    %117 = arith.subf %79, %116 : vector<8x1xf32>
    %118 = math.exp %117 : vector<8x1xf32>
    %119 = arith.subf %115, %116 : vector<8x1xf32>
    %120 = math.exp %119 : vector<8x1xf32>
    %121 = arith.mulf %118, %85 : vector<8x1xf32>
    %122 = arith.addf %121, %120 : vector<8x1xf32>
    %123 = vector.broadcast %118 : vector<8x1xf32> to vector<8x64xf32>
    %124 = arith.mulf %123, %90 : vector<8x64xf32>
    %125 = vector.broadcast %120 : vector<8x1xf32> to vector<8x64xf32>
    %126 = arith.mulf %125, %112 : vector<8x64xf32>
    %127 = arith.addf %124, %126 : vector<8x64xf32>
    %128 = vector.extract_strided_slice %7 {offsets = [3, 0, 0], sizes = [1, 8, 256], strides = [1, 1, 1]} : vector<8x8x256xf32> to vector<1x8x256xf32>
    %129 = vector.shape_cast %128 : vector<1x8x256xf32> to vector<8x256xf32>
    %cst_27 = arith.constant dense<0.000000e+00> : vector<8x256xf32>
    %130 = tpu.matmul %110, %8, %cst_27 {dimension_numbers = #tpu.dot_dimension_numbers<[1], [0], [0], [1], [0, 0, 1, 1], [], []>} : vector<8x64xf32>, vector<64x256xf32>, vector<8x256xf32> -> vector<8x256xf32>
    %131 = arith.addf %129, %130 : vector<8x256xf32>
    %132 = vector.extract_strided_slice %131 {offsets = [0, 0], sizes = [8, 192], strides = [1, 1]} : vector<8x256xf32> to vector<8x192xf32>
    %133 = arith.negf %132 : vector<8x192xf32>
    %134 = math.exp %133 : vector<8x192xf32>
    %cst_28 = arith.constant 1.000000e+00 : f32
    %135 = vector.broadcast %cst_28 : f32 to vector<8x192xf32>
    %136 = arith.addf %135, %134 : vector<8x192xf32>
    %137 = arith.divf %135, %136 : vector<8x192xf32>
    %138 = vector.extract_strided_slice %131 {offsets = [0, 192], sizes = [8, 64], strides = [1, 1]} : vector<8x256xf32> to vector<8x64xf32>
    %139 = math.tanh %138 : vector<8x64xf32>
    %140 = vector.extract_strided_slice %137 {offsets = [0, 0], sizes = [8, 64], strides = [1, 1]} : vector<8x192xf32> to vector<8x64xf32>
    %141 = vector.extract_strided_slice %137 {offsets = [0, 64], sizes = [8, 64], strides = [1, 1]} : vector<8x192xf32> to vector<8x64xf32>
    %142 = vector.extract_strided_slice %137 {offsets = [0, 128], sizes = [8, 64], strides = [1, 1]} : vector<8x192xf32> to vector<8x64xf32>
    %143 = arith.mulf %141, %108 : vector<8x64xf32>
    %144 = arith.mulf %140, %139 : vector<8x64xf32>
    %145 = arith.addf %143, %144 : vector<8x64xf32>
    %146 = math.tanh %145 : vector<8x64xf32>
    %147 = arith.mulf %142, %146 : vector<8x64xf32>
    %cst_29 = arith.constant 0.000000e+00 : f32
    %148 = vector.broadcast %cst_29 : f32 to vector<8x64xf32>
    %149 = arith.maximumf %147, %148 : vector<8x64xf32>
    %150 = arith.mulf %149, %11 : vector<8x64xf32>
    %cst_30 = arith.constant dense<0.000000e+00> : vector<8xf32>
    %151 = vector.multi_reduction <add>, %150, %cst_30 [1] : vector<8x64xf32> to vector<8xf32>
    %152 = vector.shape_cast %151 : vector<8xf32> to vector<8x1xf32>
    %153 = arith.maximumf %116, %152 : vector<8x1xf32>
    %154 = arith.subf %116, %153 : vector<8x1xf32>
    %155 = math.exp %154 : vector<8x1xf32>
    %156 = arith.subf %152, %153 : vector<8x1xf32>
    %157 = math.exp %156 : vector<8x1xf32>
    %158 = arith.mulf %155, %122 : vector<8x1xf32>
    %159 = arith.addf %158, %157 : vector<8x1xf32>
    %160 = vector.broadcast %155 : vector<8x1xf32> to vector<8x64xf32>
    %161 = arith.mulf %160, %127 : vector<8x64xf32>
    %162 = vector.broadcast %157 : vector<8x1xf32> to vector<8x64xf32>
    %163 = arith.mulf %162, %149 : vector<8x64xf32>
    %164 = arith.addf %161, %163 : vector<8x64xf32>
    %165 = vector.extract_strided_slice %7 {offsets = [4, 0, 0], sizes = [1, 8, 256], strides = [1, 1, 1]} : vector<8x8x256xf32> to vector<1x8x256xf32>
    %166 = vector.shape_cast %165 : vector<1x8x256xf32> to vector<8x256xf32>
    %cst_31 = arith.constant dense<0.000000e+00> : vector<8x256xf32>
    %167 = tpu.matmul %147, %8, %cst_31 {dimension_numbers = #tpu.dot_dimension_numbers<[1], [0], [0], [1], [0, 0, 1, 1], [], []>} : vector<8x64xf32>, vector<64x256xf32>, vector<8x256xf32> -> vector<8x256xf32>
    %168 = arith.addf %166, %167 : vector<8x256xf32>
    %169 = vector.extract_strided_slice %168 {offsets = [0, 0], sizes = [8, 192], strides = [1, 1]} : vector<8x256xf32> to vector<8x192xf32>
    %170 = arith.negf %169 : vector<8x192xf32>
    %171 = math.exp %170 : vector<8x192xf32>
    %cst_32 = arith.constant 1.000000e+00 : f32
    %172 = vector.broadcast %cst_32 : f32 to vector<8x192xf32>
    %173 = arith.addf %172, %171 : vector<8x192xf32>
    %174 = arith.divf %172, %173 : vector<8x192xf32>
    %175 = vector.extract_strided_slice %168 {offsets = [0, 192], sizes = [8, 64], strides = [1, 1]} : vector<8x256xf32> to vector<8x64xf32>
    %176 = math.tanh %175 : vector<8x64xf32>
    %177 = vector.extract_strided_slice %174 {offsets = [0, 0], sizes = [8, 64], strides = [1, 1]} : vector<8x192xf32> to vector<8x64xf32>
    %178 = vector.extract_strided_slice %174 {offsets = [0, 64], sizes = [8, 64], strides = [1, 1]} : vector<8x192xf32> to vector<8x64xf32>
    %179 = vector.extract_strided_slice %174 {offsets = [0, 128], sizes = [8, 64], strides = [1, 1]} : vector<8x192xf32> to vector<8x64xf32>
    %180 = arith.mulf %178, %145 : vector<8x64xf32>
    %181 = arith.mulf %177, %176 : vector<8x64xf32>
    %182 = arith.addf %180, %181 : vector<8x64xf32>
    %183 = math.tanh %182 : vector<8x64xf32>
    %184 = arith.mulf %179, %183 : vector<8x64xf32>
    %cst_33 = arith.constant 0.000000e+00 : f32
    %185 = vector.broadcast %cst_33 : f32 to vector<8x64xf32>
    %186 = arith.maximumf %184, %185 : vector<8x64xf32>
    %187 = arith.mulf %186, %11 : vector<8x64xf32>
    %cst_34 = arith.constant dense<0.000000e+00> : vector<8xf32>
    %188 = vector.multi_reduction <add>, %187, %cst_34 [1] : vector<8x64xf32> to vector<8xf32>
    %189 = vector.shape_cast %188 : vector<8xf32> to vector<8x1xf32>
    %190 = arith.maximumf %153, %189 : vector<8x1xf32>
    %191 = arith.subf %153, %190 : vector<8x1xf32>
    %192 = math.exp %191 : vector<8x1xf32>
    %193 = arith.subf %189, %190 : vector<8x1xf32>
    %194 = math.exp %193 : vector<8x1xf32>
    %195 = arith.mulf %192, %159 : vector<8x1xf32>
    %196 = arith.addf %195, %194 : vector<8x1xf32>
    %197 = vector.broadcast %192 : vector<8x1xf32> to vector<8x64xf32>
    %198 = arith.mulf %197, %164 : vector<8x64xf32>
    %199 = vector.broadcast %194 : vector<8x1xf32> to vector<8x64xf32>
    %200 = arith.mulf %199, %186 : vector<8x64xf32>
    %201 = arith.addf %198, %200 : vector<8x64xf32>
    %202 = vector.extract_strided_slice %7 {offsets = [5, 0, 0], sizes = [1, 8, 256], strides = [1, 1, 1]} : vector<8x8x256xf32> to vector<1x8x256xf32>
    %203 = vector.shape_cast %202 : vector<1x8x256xf32> to vector<8x256xf32>
    %cst_35 = arith.constant dense<0.000000e+00> : vector<8x256xf32>
    %204 = tpu.matmul %184, %8, %cst_35 {dimension_numbers = #tpu.dot_dimension_numbers<[1], [0], [0], [1], [0, 0, 1, 1], [], []>} : vector<8x64xf32>, vector<64x256xf32>, vector<8x256xf32> -> vector<8x256xf32>
    %205 = arith.addf %203, %204 : vector<8x256xf32>
    %206 = vector.extract_strided_slice %205 {offsets = [0, 0], sizes = [8, 192], strides = [1, 1]} : vector<8x256xf32> to vector<8x192xf32>
    %207 = arith.negf %206 : vector<8x192xf32>
    %208 = math.exp %207 : vector<8x192xf32>
    %cst_36 = arith.constant 1.000000e+00 : f32
    %209 = vector.broadcast %cst_36 : f32 to vector<8x192xf32>
    %210 = arith.addf %209, %208 : vector<8x192xf32>
    %211 = arith.divf %209, %210 : vector<8x192xf32>
    %212 = vector.extract_strided_slice %205 {offsets = [0, 192], sizes = [8, 64], strides = [1, 1]} : vector<8x256xf32> to vector<8x64xf32>
    %213 = math.tanh %212 : vector<8x64xf32>
    %214 = vector.extract_strided_slice %211 {offsets = [0, 0], sizes = [8, 64], strides = [1, 1]} : vector<8x192xf32> to vector<8x64xf32>
    %215 = vector.extract_strided_slice %211 {offsets = [0, 64], sizes = [8, 64], strides = [1, 1]} : vector<8x192xf32> to vector<8x64xf32>
    %216 = vector.extract_strided_slice %211 {offsets = [0, 128], sizes = [8, 64], strides = [1, 1]} : vector<8x192xf32> to vector<8x64xf32>
    %217 = arith.mulf %215, %182 : vector<8x64xf32>
    %218 = arith.mulf %214, %213 : vector<8x64xf32>
    %219 = arith.addf %217, %218 : vector<8x64xf32>
    %220 = math.tanh %219 : vector<8x64xf32>
    %221 = arith.mulf %216, %220 : vector<8x64xf32>
    %cst_37 = arith.constant 0.000000e+00 : f32
    %222 = vector.broadcast %cst_37 : f32 to vector<8x64xf32>
    %223 = arith.maximumf %221, %222 : vector<8x64xf32>
    %224 = arith.mulf %223, %11 : vector<8x64xf32>
    %cst_38 = arith.constant dense<0.000000e+00> : vector<8xf32>
    %225 = vector.multi_reduction <add>, %224, %cst_38 [1] : vector<8x64xf32> to vector<8xf32>
    %226 = vector.shape_cast %225 : vector<8xf32> to vector<8x1xf32>
    %227 = arith.maximumf %190, %226 : vector<8x1xf32>
    %228 = arith.subf %190, %227 : vector<8x1xf32>
    %229 = math.exp %228 : vector<8x1xf32>
    %230 = arith.subf %226, %227 : vector<8x1xf32>
    %231 = math.exp %230 : vector<8x1xf32>
    %232 = arith.mulf %229, %196 : vector<8x1xf32>
    %233 = arith.addf %232, %231 : vector<8x1xf32>
    %234 = vector.broadcast %229 : vector<8x1xf32> to vector<8x64xf32>
    %235 = arith.mulf %234, %201 : vector<8x64xf32>
    %236 = vector.broadcast %231 : vector<8x1xf32> to vector<8x64xf32>
    %237 = arith.mulf %236, %223 : vector<8x64xf32>
    %238 = arith.addf %235, %237 : vector<8x64xf32>
    %239 = vector.extract_strided_slice %7 {offsets = [6, 0, 0], sizes = [1, 8, 256], strides = [1, 1, 1]} : vector<8x8x256xf32> to vector<1x8x256xf32>
    %240 = vector.shape_cast %239 : vector<1x8x256xf32> to vector<8x256xf32>
    %cst_39 = arith.constant dense<0.000000e+00> : vector<8x256xf32>
    %241 = tpu.matmul %221, %8, %cst_39 {dimension_numbers = #tpu.dot_dimension_numbers<[1], [0], [0], [1], [0, 0, 1, 1], [], []>} : vector<8x64xf32>, vector<64x256xf32>, vector<8x256xf32> -> vector<8x256xf32>
    %242 = arith.addf %240, %241 : vector<8x256xf32>
    %243 = vector.extract_strided_slice %242 {offsets = [0, 0], sizes = [8, 192], strides = [1, 1]} : vector<8x256xf32> to vector<8x192xf32>
    %244 = arith.negf %243 : vector<8x192xf32>
    %245 = math.exp %244 : vector<8x192xf32>
    %cst_40 = arith.constant 1.000000e+00 : f32
    %246 = vector.broadcast %cst_40 : f32 to vector<8x192xf32>
    %247 = arith.addf %246, %245 : vector<8x192xf32>
    %248 = arith.divf %246, %247 : vector<8x192xf32>
    %249 = vector.extract_strided_slice %242 {offsets = [0, 192], sizes = [8, 64], strides = [1, 1]} : vector<8x256xf32> to vector<8x64xf32>
    %250 = math.tanh %249 : vector<8x64xf32>
    %251 = vector.extract_strided_slice %248 {offsets = [0, 0], sizes = [8, 64], strides = [1, 1]} : vector<8x192xf32> to vector<8x64xf32>
    %252 = vector.extract_strided_slice %248 {offsets = [0, 64], sizes = [8, 64], strides = [1, 1]} : vector<8x192xf32> to vector<8x64xf32>
    %253 = vector.extract_strided_slice %248 {offsets = [0, 128], sizes = [8, 64], strides = [1, 1]} : vector<8x192xf32> to vector<8x64xf32>
    %254 = arith.mulf %252, %219 : vector<8x64xf32>
    %255 = arith.mulf %251, %250 : vector<8x64xf32>
    %256 = arith.addf %254, %255 : vector<8x64xf32>
    %257 = math.tanh %256 : vector<8x64xf32>
    %258 = arith.mulf %253, %257 : vector<8x64xf32>
    %cst_41 = arith.constant 0.000000e+00 : f32
    %259 = vector.broadcast %cst_41 : f32 to vector<8x64xf32>
    %260 = arith.maximumf %258, %259 : vector<8x64xf32>
    %261 = arith.mulf %260, %11 : vector<8x64xf32>
    %cst_42 = arith.constant dense<0.000000e+00> : vector<8xf32>
    %262 = vector.multi_reduction <add>, %261, %cst_42 [1] : vector<8x64xf32> to vector<8xf32>
    %263 = vector.shape_cast %262 : vector<8xf32> to vector<8x1xf32>
    %264 = arith.maximumf %227, %263 : vector<8x1xf32>
    %265 = arith.subf %227, %264 : vector<8x1xf32>
    %266 = math.exp %265 : vector<8x1xf32>
    %267 = arith.subf %263, %264 : vector<8x1xf32>
    %268 = math.exp %267 : vector<8x1xf32>
    %269 = arith.mulf %266, %233 : vector<8x1xf32>
    %270 = arith.addf %269, %268 : vector<8x1xf32>
    %271 = vector.broadcast %266 : vector<8x1xf32> to vector<8x64xf32>
    %272 = arith.mulf %271, %238 : vector<8x64xf32>
    %273 = vector.broadcast %268 : vector<8x1xf32> to vector<8x64xf32>
    %274 = arith.mulf %273, %260 : vector<8x64xf32>
    %275 = arith.addf %272, %274 : vector<8x64xf32>
    %276 = vector.extract_strided_slice %7 {offsets = [7, 0, 0], sizes = [1, 8, 256], strides = [1, 1, 1]} : vector<8x8x256xf32> to vector<1x8x256xf32>
    %277 = vector.shape_cast %276 : vector<1x8x256xf32> to vector<8x256xf32>
    %cst_43 = arith.constant dense<0.000000e+00> : vector<8x256xf32>
    %278 = tpu.matmul %258, %8, %cst_43 {dimension_numbers = #tpu.dot_dimension_numbers<[1], [0], [0], [1], [0, 0, 1, 1], [], []>} : vector<8x64xf32>, vector<64x256xf32>, vector<8x256xf32> -> vector<8x256xf32>
    %279 = arith.addf %277, %278 : vector<8x256xf32>
    %280 = vector.extract_strided_slice %279 {offsets = [0, 0], sizes = [8, 192], strides = [1, 1]} : vector<8x256xf32> to vector<8x192xf32>
    %281 = arith.negf %280 : vector<8x192xf32>
    %282 = math.exp %281 : vector<8x192xf32>
    %cst_44 = arith.constant 1.000000e+00 : f32
    %283 = vector.broadcast %cst_44 : f32 to vector<8x192xf32>
    %284 = arith.addf %283, %282 : vector<8x192xf32>
    %285 = arith.divf %283, %284 : vector<8x192xf32>
    %286 = vector.extract_strided_slice %279 {offsets = [0, 192], sizes = [8, 64], strides = [1, 1]} : vector<8x256xf32> to vector<8x64xf32>
    %287 = math.tanh %286 : vector<8x64xf32>
    %288 = vector.extract_strided_slice %285 {offsets = [0, 0], sizes = [8, 64], strides = [1, 1]} : vector<8x192xf32> to vector<8x64xf32>
    %289 = vector.extract_strided_slice %285 {offsets = [0, 64], sizes = [8, 64], strides = [1, 1]} : vector<8x192xf32> to vector<8x64xf32>
    %290 = vector.extract_strided_slice %285 {offsets = [0, 128], sizes = [8, 64], strides = [1, 1]} : vector<8x192xf32> to vector<8x64xf32>
    %291 = arith.mulf %289, %256 : vector<8x64xf32>
    %292 = arith.mulf %288, %287 : vector<8x64xf32>
    %293 = arith.addf %291, %292 : vector<8x64xf32>
    %294 = math.tanh %293 : vector<8x64xf32>
    %295 = arith.mulf %290, %294 : vector<8x64xf32>
    %cst_45 = arith.constant 0.000000e+00 : f32
    %296 = vector.broadcast %cst_45 : f32 to vector<8x64xf32>
    %297 = arith.maximumf %295, %296 : vector<8x64xf32>
    %298 = arith.mulf %297, %11 : vector<8x64xf32>
    %cst_46 = arith.constant dense<0.000000e+00> : vector<8xf32>
    %299 = vector.multi_reduction <add>, %298, %cst_46 [1] : vector<8x64xf32> to vector<8xf32>
    %300 = vector.shape_cast %299 : vector<8xf32> to vector<8x1xf32>
    %301 = arith.maximumf %264, %300 : vector<8x1xf32>
    %302 = arith.subf %264, %301 : vector<8x1xf32>
    %303 = math.exp %302 : vector<8x1xf32>
    %304 = arith.subf %300, %301 : vector<8x1xf32>
    %305 = math.exp %304 : vector<8x1xf32>
    %306 = arith.mulf %303, %270 : vector<8x1xf32>
    %307 = arith.addf %306, %305 : vector<8x1xf32>
    %308 = vector.broadcast %303 : vector<8x1xf32> to vector<8x64xf32>
    %309 = arith.mulf %308, %275 : vector<8x64xf32>
    %310 = vector.broadcast %305 : vector<8x1xf32> to vector<8x64xf32>
    %311 = arith.mulf %310, %297 : vector<8x64xf32>
    %312 = arith.addf %309, %311 : vector<8x64xf32>
    %313 = tpu.reciprocal %307 {approx = true} : vector<8x1xf32> -> vector<8x1xf32>
    %314 = arith.mulf %307, %313 : vector<8x1xf32>
    %cst_47 = arith.constant 2.000000e+00 : f32
    %315 = vector.broadcast %cst_47 : f32 to vector<8x1xf32>
    %316 = arith.subf %315, %314 : vector<8x1xf32>
    %317 = arith.mulf %313, %316 : vector<8x1xf32>
    %318 = vector.broadcast %317 : vector<8x1xf32> to vector<8x64xf32>
    %319 = arith.mulf %312, %318 : vector<8x64xf32>
    %c0_48 = arith.constant 0 : index
    %c0_49 = arith.constant 0 : index
    %320 = vector.load %arg6[%c0_48, %c0_49] : memref<64x128xf32, #tpu.memory_space<vmem>>, vector<64x128xf32>
    %cst_50 = arith.constant dense<0.000000e+00> : vector<8x128xf32>
    %321 = tpu.matmul %319, %320, %cst_50 {dimension_numbers = #tpu.dot_dimension_numbers<[1], [0], [0], [1], [0, 0, 1, 1], [], []>} : vector<8x64xf32>, vector<64x128xf32>, vector<8x128xf32> -> vector<8x128xf32>
    %c0_51 = arith.constant 0 : index
    %c0_52 = arith.constant 0 : index
    %322 = vector.load %arg7[%c0_51, %c0_52] : memref<1x128xf32, #tpu.memory_space<vmem>>, vector<1x128xf32>
    %323 = vector.broadcast %322 : vector<1x128xf32> to vector<8x128xf32>
    %324 = arith.addf %321, %323 : vector<8x128xf32>
    %cst_53 = arith.constant -3.000000e-03 : f32
    %cst_54 = arith.constant 3.000000e-03 : f32
    %325 = vector.broadcast %cst_53 : f32 to vector<8x128xf32>
    %326 = arith.maximumf %325, %324 : vector<8x128xf32>
    %327 = vector.broadcast %cst_54 : f32 to vector<8x128xf32>
    %328 = arith.minimumf %327, %326 : vector<8x128xf32>
    %c0_55 = arith.constant 0 : index
    %c0_56 = arith.constant 0 : index
    %329 = vector.load %arg8[%c0_55, %c0_56] : memref<8x128xf32, #tpu.memory_space<vmem>>, vector<8x128xf32>
    tpu.vector_store %arg8[%c0_55, %c0_56], %328 {strides = array<i32>} : memref<8x128xf32, #tpu.memory_space<vmem>>, vector<8x128xf32>,
    return
  }
  func.func @transform_0(%arg0: i32) -> (i32, i32, i32) {
    %c0_i32 = arith.constant 0 : i32
    %c0_i32_0 = arith.constant 0 : i32
    %c0_i32_1 = arith.constant 0 : i32
    return %c0_i32, %arg0, %c0_i32_0 : i32, i32, i32
  }
  func.func @transform_1(%arg0: i32) -> (i32, i32) {
    %c0_i32 = arith.constant 0 : i32
    %c0_i32_0 = arith.constant 0 : i32
    %c0_i32_1 = arith.constant 0 : i32
    return %c0_i32, %c0_i32_0 : i32, i32
  }
  func.func @transform_2(%arg0: i32) -> (i32, i32) {
    %c0_i32 = arith.constant 0 : i32
    %c0_i32_0 = arith.constant 0 : i32
    %c0_i32_1 = arith.constant 0 : i32
    return %c0_i32, %c0_i32_0 : i32, i32
  }
  func.func @transform_3(%arg0: i32) -> (i32, i32) {
    %c0_i32 = arith.constant 0 : i32
    %c0_i32_0 = arith.constant 0 : i32
    %c0_i32_1 = arith.constant 0 : i32
    return %c0_i32, %c0_i32_0 : i32, i32
  }
  func.func @transform_4(%arg0: i32) -> (i32, i32) {
    %c0_i32 = arith.constant 0 : i32
    %c0_i32_0 = arith.constant 0 : i32
    %c0_i32_1 = arith.constant 0 : i32
    return %c0_i32, %c0_i32_0 : i32, i32
  }
  func.func @transform_5(%arg0: i32) -> (i32, i32) {
    %c0_i32 = arith.constant 0 : i32
    %c0_i32_0 = arith.constant 0 : i32
    %c0_i32_1 = arith.constant 0 : i32
    return %c0_i32, %c0_i32_0 : i32, i32
  }
  func.func @transform_6(%arg0: i32) -> (i32, i32) {
    %c0_i32 = arith.constant 0 : i32
    %c0_i32_0 = arith.constant 0 : i32
    %c0_i32_1 = arith.constant 0 : i32
    return %c0_i32, %c0_i32_0 : i32, i32
  }
  func.func @transform_7(%arg0: i32) -> (i32, i32) {
    %c0_i32 = arith.constant 0 : i32
    %c0_i32_0 = arith.constant 0 : i32
    return %arg0, %c0_i32 : i32, i32
  }
}

</mosaic_0001>

<bundles_post_ra>
// kernel: tpu_custom_call.1
= control target key start
LH: loop header
LB: loop body
LE: loop exit
PB: predicated region body
PF: predicated region fallthrough
CT: control target
= control target key end

     0   :  { %s2996_s0 = inlined_call_operand.hbm [shape: f32[8,16,64], index: 0, kind: input, shape index: {}]   ;;  %s2997_s1 = inlined_call_operand.hbm [shape: f32[64,256], index: 1, kind: input, shape index: {}]   ;;  %s2998_s2 = inlined_call_operand.hbm [shape: f32[64,256], index: 2, kind: input, shape index: {}]   ;;  %s2999_s3 = inlined_call_operand.vmem [shape: f32[1,256], index: 3, kind: input, shape index: {}]   ;;  %s3000_s4 = inlined_call_operand.vmem [shape: f32[1,64], index: 4, kind: input, shape index: {}]   ;;  %s3001_s5 = inlined_call_operand.hbm [shape: f32[64,128], index: 5, kind: input, shape index: {}]   ;;  %s3002_s6 = inlined_call_operand.vmem [shape: f32[1,128], index: 6, kind: input, shape index: {}]   ;;  %s3003_s7 = inlined_call_operand.hbm [shape: f32[16,128], index: 7, kind: output, shape index: {}]  }
   0x1   :  { %3013 = sst [smem:[#allocation19_spill]] %s2997_s1 }
   0x2   :  { %12 = vsyncpa [#allocation3], 0 }
   0x3   :  { %14 = vsyncpa [#allocation3 + $0x1], 0 }
   0x4   :  { %15 = vsyncpa [#allocation6], 0 }
   0x5   :  { %16 = vsyncpa [#allocation9], 0 }
   0x6   :  { %17 = vsyncpa [#allocation4], 0 }
   0x7   :  { %19 = vsyncpa [#allocation4 + $0x1], 0  ;;  %s2455_s24 = smov 0   ;;  %s2457_s25 = smov 0  }
   0x8   :  { %s2459_s26 = smov 0   ;;  %s2461_s27 = smov 0  }
   0x9 LB: > { %3014 = sst [smem:[#allocation15_spill]] %s2388_s24  ;;  %s2476_s28 = sadd.s32 4294967295, %s2400_s27   ;;  %s2400_s27 = sphi %s2461_s27, %s3041_s27   ;;  %s2396_s26 = sphi %s2459_s26, %s3045_s26   ;;  %s2392_s25 = sphi %s2457_s25, %s3044_s25   ;;  %s2388_s24 = sphi %s2455_s24, %s3043_s24  }
   0xa   : > { %s1728_s29 = sadd.s32 4294967294, %s2400_s27   ;;  %s2480_s30 = sadd.s32 1, %s2400_s27  }
   0xb   : > { %3015 = sst [smem:[#allocation16_spill]] %s2480_s30  ;;  %s32_s8 = sadd.s32 1, %s2396_s26 }
   0xc   : > { %s29_s9 = ssub.s32 %s2400_s27, %s2480_s30  ;;  %p39_p0 = scmp.ne.s32.totalorder %s2396_s26, %s2392_s25 }
   0xd   : > { %p30_p1 = scmp.eq.s32.totalorder %s29_s9, 0  ;;  %p40_p2 = scmp.eq.s32.totalorder %s2400_s27, 0 }
   0xe   : > { %p45_p3 = scmp.ne.s32.totalorder %s2392_s25, %s2388_s24  ;;  %p3004_p4 = scmp.eq.s32.totalorder %s2476_s28, 0 }
   0xf   : > { %s2492_s10 = scalar_select %p30_p1, %s2396_s26, %s32_s8  }
  0x10   : > { %p2494_p5 = por %p40_p2, %p39_p0  ;;  %p2500_p6 = por %p3004_p4, %p45_p3 }
  0x11   : > { %3016 = sst [smem:[#allocation17_spill]] %s2492_s10  ;;  %p195_p7 = scmp.eq.s32.totalorder %s2476_s28, 1 }
  0x12   : > { %s3017_s11 = scalar_select %p2494_p5, 1, 0 }
  0x13   : > { %s3018_s12 = scalar_select %p2500_p6, 1, 0 }
  0x14   : > { %p201_p8 = scmp.eq.s32.totalorder %s1728_s29, 1  ;;  %p1729_p9 = scmp.ge.s32.totalorder %s2400_s27, 1 }
  0x15   : > { %p208_p10 = scmp.lt.s32.totalorder %s2400_s27, 3  ;;  %p2507_p11 = por %p195_p7, %p39_p0 }
  0x16   : > { %p2511_p12 = por %p201_p8, %p45_p3  ;;  %s2402_s16 = smov [#allocation5]  }
  0x17   : > { %s3019_s13 = scalar_select %p2507_p11, 1, 0 }
  0x18   : > { %s3020_s14 = scalar_select %p2511_p12, 1, 0 }
  0x19   : > { %p2515_p13 = pnand %p1729_p9, %p208_p10  ;;  %s220_s17 = sshll.u32 %s2402_s16, 4  ;;  %s221_s17 = int_to_ptr.vmem [resolvable:$true] %s220_s17 }
  0x1a   : > { %3021 = sst [smem:[#allocation18_spill]] %s3020_s14  ;;  %s2403_s19 = smov [#allocation7]  }
  0x1b   : > { %s3022_s15 = scalar_select %p2515_p13, 1, 0 }
  0x1c   : > { %p2013_p1 = pneg %p2515_p13  ;;  %s233_s20 = sshll.u32 %s2403_s19, 4  ;;  %s234_s20 = int_to_ptr.vmem [resolvable:$true] %s233_s20 }
  0x1d   : > { %s3024_s1 = sld [smem:[#allocation19_spill]] }
  0x1e   : > { %p2523_p2 = pnand %p2013_p1, %p3004_p4 }
  0x20   : > { %p2537_p8 = pneg %p2523_p2 }
  0x23   : > { %s2212_s23 = scalar_lea.hbm %s3024_s1, 2048 }
  0x24   : > { %p2213_p7 = scmp.ne.s32.totalorder %s3024_s1, %s2212_s23  ;;  %p2219_p1 = scmp.lt.u32.totalorder %s2212_s23, %s3024_s1 }
  0x26   : > { %p2215_p9 = pnand %p2537_p8, %p2213_p7 }
  0x28   : > { %p2216_p10 = pneg %p2215_p9 }
  0x2a   : > { %p2221_p0 = pnand %p2219_p1, %p2216_p10 }
  0x2c   : > { %2224 = shalt.err (!%p2221_p0)
}
  0x2d   : > { %s2225_s19 = scalar_lea.vmem %s221_s17, 2048  ;;  %p2233_p11 = scmp.lt.s32.totalorder %s221_s17, %s221_s17 }
  0x2e   : > { %p2226_p4 = scmp.ne.s32.totalorder %s221_s17, %s2225_s19  ;;  %p2234_p6 = scmp.lt.s32.totalorder %s2225_s19, %s2225_s19 }
  0x30   : > { %p2228_p3 = pnand %p2226_p4, %p2537_p8  ;;  %p2235_p13 = por %p2234_p6, %p2233_p11 }
  0x32   : > { %p2229_p12 = pneg %p2228_p3 }
  0x34   : > { %p2236_p5 = pnand %p2235_p13, %p2229_p12 }
  0x36   : > { %2239 = shalt.err (!%p2236_p5)
}
  0x37   : > { %s2404_s21 = smov 256   ;;  %s2405_s10 = smov 16  }
  0x38   : > { %2016 = dma.hbm_to_vmem [thread:$0]  (!%p2523_p2), %s3024_s1, 2048, %s221_s17, [#allocation6], %s2404_s21, %s2404_s21, %s2405_s10  }
  0x39   : > { %p3026_p4 = scmp.ne.s32.totalorder %s3017_s11, 0  ;;  %p3027_p0 = scmp.lt.s32.totalorder %s2400_s27, 2 }
  0x3a   : > { %s2240_s19 = scalar_lea.hbm %s2998_s2, 2048 }
  0x3b   : > { %p2559_p3 = pnand %p3027_p0, %p3026_p4  ;;  %p2241_p5 = scmp.ne.s32.totalorder %s2998_s2, %s2240_s19 }
  0x3c   : > { %p2247_p12 = scmp.lt.u32.totalorder %s2240_s19, %s2998_s2 }
  0x3d   : > { %s3028_s29 = scalar_select %p2559_p3, 1, 0 }
  0x3e   : > { %p2243_p6 = pnand %p2241_p5, %p2537_p8 }
  0x40   : > { %p2244_p11 = pneg %p2243_p6 }
  0x42   : > { %p2249_p13 = pnand %p2247_p12, %p2244_p11 }
  0x44   : > { %2252 = shalt.err (!%p2249_p13)
}
  0x45   : > { %s2253_s11 = scalar_lea.vmem %s234_s20, 2048  ;;  %p2261_p1 = scmp.lt.s32.totalorder %s234_s20, %s234_s20 }
  0x46   : > { %p2254_p7 = scmp.ne.s32.totalorder %s234_s20, %s2253_s11  ;;  %p2262_p4 = scmp.lt.s32.totalorder %s2253_s11, %s2253_s11 }
  0x48   : > { %p2256_p9 = pnand %p2254_p7, %p2537_p8  ;;  %p2263_p0 = por %p2262_p4, %p2261_p1 }
  0x4a   : > { %p2257_p10 = pneg %p2256_p9 }
  0x4c   : > { %p2264_p3 = pnand %p2263_p0, %p2257_p10 }
  0x4e   : > { %2267 = shalt.err (!%p2264_p3)
}
  0x4f   : > { %2019 = dma.hbm_to_vmem [thread:$0]  (!%p2523_p2), %s2998_s2, 2048, %s234_s20, [#allocation6], %s2404_s21, %s2404_s21, %s2405_s10  }
  0x50   : > { %s2406_s23 = smov [#allocation8]   ;;  %s2268_s22 = scalar_lea.hbm %s3001_s5, 1024 }
  0x51   : > { %s252_s8 = sshll.u32 %s2406_s23, 4  ;;  %p2269_p3 = scmp.ne.s32.totalorder %s3001_s5, %s2268_s22  ;;  %s253_s8 = int_to_ptr.vmem [resolvable:$true] %s252_s8 }
  0x52   : > { %p2275_p11 = scmp.lt.u32.totalorder %s2268_s22, %s3001_s5 }
  0x53   : > { %p2271_p5 = pnand %p2269_p3, %p2537_p8 }
  0x55   : > { %p2272_p6 = pneg %p2271_p5 }
  0x57   : > { %p2277_p12 = pnand %p2275_p11, %p2272_p6 }
  0x59   : > { %2280 = shalt.err (!%p2277_p12)
}
  0x5a   : > { %s2281_s20 = scalar_lea.vmem %s253_s8, 1024  ;;  %p2289_p10 = scmp.lt.s32.totalorder %s253_s8, %s253_s8 }
  0x5b   : > { %p2282_p13 = scmp.ne.s32.totalorder %s253_s8, %s2281_s20  ;;  %p2290_p1 = scmp.lt.s32.totalorder %s2281_s20, %s2281_s20 }
  0x5d   : > { %p2284_p7 = pnand %p2282_p13, %p2537_p8  ;;  %p2291_p4 = por %p2290_p1, %p2289_p10 }
  0x5f   : > { %p2285_p9 = pneg %p2284_p7 }
  0x61   : > { %p2292_p0 = pnand %p2291_p4, %p2285_p9 }
  0x63   : > { %2295 = shalt.err (!%p2292_p0)
}
  0x64   : > { %s2407_s10 = smov 128   ;;  %s2408_s1 = smov 8  }
  0x65   : > { %2022 = dma.hbm_to_vmem [thread:$0]  (!%p2523_p2), %s3001_s5, 1024, %s253_s8, [#allocation9], %s2407_s10, %s2407_s10, %s2408_s1  }
  0x66   : > { %s269_s30 = sand.u32 1, %s2396_s26   ;;  %s1735_s14 = sshll.u32 %s2400_s27, 7 }
  0x67   : > { %s1734_s23 = sshll.u32 %s269_s30, 6  ;;  %s2609_s22 = scalar_lea.hbm %s2996_s0, %s1735_s14 }
  0x68   : > { %s273_s18 = scalar_lea.vmem [#allocation2], %s1734_s23  ;;  %s2613_s11 = scalar_lea.sflag [#allocation3], %s269_s30 }
  0x69   : > { %s279_s17 = sshll.u32 %s273_s18, 4  ;;  %s2296_s20 = scalar_lea.hbm %s2609_s22, 1024  ;;  %s2611_s17 = int_to_ptr.vmem [resolvable:$true] %s279_s17 }
  0x6a   : > { %p2297_p2 = scmp.ne.s32.totalorder %s2609_s22, %s2296_s20  ;;  %p3029_p8 = scmp.ne.s32.totalorder %s3028_s29, 0 }
  0x6b   : > { %s2301_s9 = scalar_lea.hbm %s2996_s0, 2048  ;;  %p2302_p11 = scmp.lt.u32.totalorder %s2609_s22, %s2996_s0 }
  0x6c   : > { %p2298_p3 = pneg %p3029_p8  ;;  %p2303_p12 = scmp.lt.u32.totalorder %s2301_s9, %s2296_s20 }
  0x6d   : > { %p2305_p7 = scmp.lt.u32.totalorder %s2296_s20, %s2609_s22 }
  0x6e   : > { %p2299_p5 = pnand %p2298_p3, %p2297_p2  ;;  %p2304_p13 = por %p2303_p12, %p2302_p11 }
  0x70   : > { %p2300_p6 = pneg %p2299_p5  ;;  %p2306_p9 = por %p2305_p7, %p2304_p13 }
  0x72   : > { %p2307_p10 = pnand %p2306_p9, %p2300_p6 }
  0x74   : > { %2310 = shalt.err (!%p2307_p10)
}
  0x75   : > { %s2311_s30 = scalar_lea.vmem %s2611_s17, 1024  ;;  %s2409_s23 = smov [#allocation2]  }
  0x76   : > { %p2312_p1 = scmp.ne.s32.totalorder %s2611_s17, %s2311_s30  ;;  %s2316_s19 = sshll.u32 %s2409_s23, 4  ;;  %s2317_s19 = int_to_ptr.vmem [resolvable:$false] %s2316_s19 }
  0x77   : > { %s2318_s18 = scalar_lea.vmem %s2317_s19, 2048  ;;  %p2319_p2 = scmp.lt.s32.totalorder %s2611_s17, %s2317_s19 }
  0x78   : > { %p2314_p4 = pnand %p2312_p1, %p2298_p3  ;;  %p2320_p5 = scmp.lt.s32.totalorder %s2318_s18, %s2311_s30 }
  0x7a   : > { %p2315_p0 = pneg %p2314_p4  ;;  %p2321_p11 = por %p2320_p5, %p2319_p2 }
  0x7c   : > { %p2322_p12 = pnand %p2321_p11, %p2315_p0 }
  0x7e   : > { %2325 = shalt.err (!%p2322_p12)
}
  0x7f   : > { %2026 = dma.hbm_to_vmem [thread:$0]  (!%p3029_p8), %s2609_s22, 1024, %s2611_s17, %s2613_s11, %s2404_s21, %s2407_s10, %s2408_s1  }
  0x80   : > { %p3030_p3 = scmp.ne.s32.totalorder %s3022_s15, 0 }
  0x81   : > { %s2647_s20 = sand.u32 (!%p3030_p3), 1, %s2392_s25   ;;  %p3031_p6 = scmp.ne.s32.totalorder (!%p3030_p3), %s3018_s12, 0 }
  0x82   : > { %291 = sbr.rel (%p3030_p3) target bundleno = 5316 (0x14c4), region = 48  ;;  %s1737_s8 = sshll.u32 (!%p3030_p3), %s2647_s20, 6 }
  0x83   : > { %s294_s24 = scalar_lea.sflag (!%p3030_p3), [#allocation3], %s2647_s20  ;;  %s2651_s9 = scalar_lea.vmem (!%p3030_p3), [#allocation2], %s1737_s8 }
  0x89   : > { %2371 = dma.done.wait (%p3031_p6), %s294_s24, 1024  }
  0x8a   : > { %2373 = vsyncadd (%p3031_p6), %s294_s24, 4294966272  ;;  %p3032_p8 = scmp.eq.s32.totalorder %s2476_s28, 0 }
  0x8c   : > { %2375 = dma.done.wait (%p3032_p8), [#allocation6], 4096   ;;  %p3033_p13 = pmov %p3032_p8 }
  0x8d   : > { %p3034_p7 = pmov %p3032_p8 }
  0x8e   : > { %2377 = vsyncadd (%p3033_p13), [#allocation6], 4294963200 }
  0x8f   : > { %2379 = dma.done.wait (%p3034_p7), [#allocation9], 1024   ;;  %p3035_p9 = pmov %p3034_p7 }
  0x90   : > { %v2410_v0 = vmov 0.0   ;;  %v349_v1 = vld [vmem:[#allocation5 + $0x8] sm:$0xff]  ;;  %v351_v2 = vld [vmem:[#allocation5 + $0x18] sm:$0xff]  ;;  %v348_v3 = vld [vmem:[#allocation5] sm:$0xff]  ;;  %vm376_vm0 = vcmask 523264   ;;  %v366_v63 = vlaneseq  ;;  %s2411_s21 = smov 64  }
  0x91   : > { %2381 = vsyncadd (%p3035_p9), [#allocation9], 4294966272  ;;  %465 = vmatprep.mubr.f32.mxu1 %v2410_v0  ;;  %848 = vmatprep.mubr.f32.mxu0 %v2410_v0  ;;  %v1809_v4 = vpack.c.bf16 %v351_v2, %v349_v1  ;;  %v350_v5 = vld [vmem:[#allocation5 + $0x10] sm:$0xff]  ;;  %v353_v6 = vld [vmem:[#allocation5 + $0x28] sm:$0xff]  ;;  %vm2413_vm1 = vmmov 0   ;;  %s1741_s1 = sshll.u32 %s2647_s20, 3 }
  0x92   : > { %v355_v7 = vld [vmem:[#allocation5 + $0x38] sm:$0xff]  ;;  %v1811_v8 = vpack.c.bf16 %v350_v5, %v348_v3  ;;  %v352_v10 = vld [vmem:[#allocation5 + $0x20] sm:$0xff]  ;;  %v354_v11 = vld [vmem:[#allocation5 + $0x30] sm:$0xff]  ;;  %v367_v3 = vshrl.u32 %v366_v63, 7  ;;  %s1778_s11 = sshll.u32 %s2476_s28, 7  ;;  %s339_s14 = scalar_lea.vmem [#allocation10], %s1741_s1 }
  0x93   : > { %v1813_v9 = vpack.c.bf16 %v355_v7, %v353_v6  ;;  %v357_v12 = vld [vmem:[#allocation5 + $0x48] sm:$0xff]  ;;  %1810 = vmatprep.subr.bf16.mxu1 %v1809_v4  ;;  %v359_v13 = vld [vmem:[#allocation5 + $0x58] sm:$0xff]  ;;  %v1815_v14 = vpack.c.bf16 %v354_v11, %v352_v10  ;;  %v356_v15 = vld [vmem:[#allocation5 + $0x40] sm:$0xff]  ;;  %s1629_s16 = sshll.u32 %s339_s14, 4  ;;  %s2952_s19 = scalar_lea.hbm %s3003_s7, %s1778_s11  ;;  %s2954_s16 = int_to_ptr.vmem [resolvable:$true] %s1629_s16 }
  0x94   : > { %1812 = vmatpush1.bf16.msra.mxu1 %v1811_v8  ;;  %v358_v16 = vld [vmem:[#allocation5 + $0x50] sm:$0xff]  ;;  %v1817_v17 = vpack.c.bf16 %v359_v13, %v357_v12  ;;  %v361_v18 = vld [vmem:[#allocation5 + $0x68] sm:$0xff]  ;;  %v363_v19 = vld [vmem:[#allocation5 + $0x78] sm:$0xff]  ;;  %v372_v6 = vsub.s32 1, %v367_v3  ;;  %s1616_s18 = scalar_lea.sflag [#allocation4], %s2647_s20  ;;  %s2326_s8 = scalar_lea.vmem %s2954_s16, 128 }
  0x95   : > { %1814 = vmatprep.subr.bf16.mxu1 %v1813_v9  ;;  %v515_v20 = vld [vmem:[#allocation7 + $0x8] sm:$0xff]  ;;  %v517_v21 = vld [vmem:[#allocation7 + $0x18] sm:$0xff]  ;;  %v514_v22 = vld [vmem:[#allocation7] sm:$0xff]  ;;  %v1819_v26 = vpack.c.bf16 %v358_v16, %v356_v15  ;;  %v1821_v30 = vpack.c.bf16 %v363_v19, %v361_v18  ;;  %v368_v15 = vsub.s32 0, %v367_v3  ;;  %p2327_p10 = scmp.ne.s32.totalorder %s2954_s16, %s2326_s8  ;;  %p3036_p1 = scmp.ne.s32.totalorder %s3019_s13, 0 }
  0x96   : > { %v516_v23 = vld [vmem:[#allocation7 + $0x10] sm:$0xff]  ;;  %v2667_v24 = vpack.c.bf16 %v517_v21, %v515_v20  ;;  %v519_v25 = vld [vmem:[#allocation7 + $0x28] sm:$0xff]  ;;  %v360_v27 = vld [vmem:[#allocation5 + $0x60] sm:$0xff]  ;;  %s2414_s28 = smov [#allocation10]  }
  0x97   : > { %v2669_v28 = vpack.c.bf16 %v516_v23, %v514_v22  ;;  %v521_v29 = vld [vmem:[#allocation7 + $0x38] sm:$0xff]  ;;  %v362_v31 = vld [vmem:[#allocation5 + $0x70] sm:$0xff]  ;;  %v518_v33 = vld [vmem:[#allocation7 + $0x20] sm:$0xff]  ;;  %p2328_p4 = pnand %p2327_p10, %p3036_p1  ;;  %s2330_s24 = sshll.u32 %s2414_s28, 4  ;;  %s2331_s24 = int_to_ptr.vmem [resolvable:$false] %s2330_s24 }
  0x98   : > { %1816 = vmatpush1.bf16.msra.mxu1 %v1815_v14  ;;  %v2671_v32 = vpack.c.bf16 %v521_v29, %v519_v25  ;;  %v520_v34 = vld [vmem:[#allocation7 + $0x30] sm:$0xff]  ;;  %1858 = vmatprep.subr.bf16.mxu0 %v2667_v24  ;;  %v523_v35 = vld [vmem:[#allocation7 + $0x48] sm:$0xff]  ;;  %v525_v36 = vld [vmem:[#allocation7 + $0x58] sm:$0xff]  ;;  %v1823_v37 = vpack.c.bf16 %v362_v31, %v360_v27  ;;  %p2333_p2 = scmp.lt.s32.totalorder %s2954_s16, %s2331_s24 }
  0x99   : > { %1818 = vmatprep.subr.bf16.mxu1 %v1817_v17  ;;  %1860 = vmatpush1.bf16.msra.mxu0 %v2669_v28  ;;  %v2676_v38 = vpack.c.bf16 %v520_v34, %v518_v33  ;;  %v2678_v39 = vpack.c.bf16 %v525_v36, %v523_v35  ;;  %v522_v40 = vld [vmem:[#allocation7 + $0x40] sm:$0xff]  ;;  %v524_v41 = vld [vmem:[#allocation7 + $0x50] sm:$0xff]  ;;  %v527_v42 = vld [vmem:[#allocation7 + $0x68] sm:$0xff]  ;;  %p2329_p0 = pneg %p2328_p4 }
  0x9a   : > { %1862 = vmatprep.subr.bf16.mxu0 %v2671_v32  ;;  %v529_v43 = vld [vmem:[#allocation7 + $0x78] sm:$0xff]  ;;  %v340_v44 = vld [vmem:[%s2651_s9] sm:$0xff]  ;;  %v2683_v45 = vpack.c.bf16 %v524_v41, %v522_v40  ;;  %v528_v48 = vld [vmem:[#allocation7 + $0x70] sm:$0xff] }
  0x9b   : > { %v2686_v46 = vpack.c.bf16 %v529_v43, %v527_v42  ;;  %v526_v47 = vld [vmem:[#allocation7 + $0x60] sm:$0xff]  ;;  %v341_v49 = vld [vmem:[%s2651_s9 + $0x8] sm:$0xff]  ;;  %v342_v51 = vld [vmem:[%s2651_s9 + $0x10] sm:$0xff] }
  0x9c   : > { %1820 = vmatpush1.bf16.msra.mxu1 %v1819_v26  ;;  %v2694_v50 = vpack.c.bf16 %v528_v48, %v526_v47  ;;  %v343_v52 = vld [vmem:[%s2651_s9 + $0x18] sm:$0xff]  ;;  %v344_v53 = vld [vmem:[%s2651_s9 + $0x20] sm:$0xff]  ;;  %v345_v54 = vld [vmem:[%s2651_s9 + $0x28] sm:$0xff] }
  0x9d   : > { %1822 = vmatprep.subr.bf16.mxu1 %v1821_v30  ;;  %1864 = vmatpush1.bf16.msra.mxu0 %v2676_v38  ;;  %v346_v55 = vld [vmem:[%s2651_s9 + $0x30] sm:$0xff]  ;;  %v347_v56 = vld [vmem:[%s2651_s9 + $0x38] sm:$0xff]  ;;  %v364_v8 = vld [vmem:[%s2999_s3] sm:$0x3]  ;;  %s2332_s9 = scalar_lea.vmem %s2331_s24, 256 }
  0x9e   : > { %1866 = vmatprep.subr.bf16.mxu0 %v2678_v39  ;;  %v2761_v10 = vrot.slane %v364_v8, %v372_v6  ;;  %v2765_v16 = vrot.slane %v364_v8, %v368_v15  ;;  %p2334_p5 = scmp.lt.s32.totalorder %s2332_s9, %s2326_s8 }
  0xa0   : > { %1824 = vmatpush1.bf16.msra.mxu1 %v1823_v37  ;;  %p2335_p11 = por %p2334_p5, %p2333_p2 }
  0xa1   : > { %1826 = vmatprep.subr.bf16.mxu1 %v2667_v24  ;;  %1868 = vmatpush1.bf16.msra.mxu0 %v2683_v45 }
  0xa2   : > { %1870 = vmatprep.subr.bf16.mxu0 %v2686_v46  ;;  %p2336_p12 = pnand %p2335_p11, %p2329_p0 }
  0xa3   : > { %1742 = vmatmul.mubr.msk.f32.vlgmr.msra.gmra.mrb[0].mxu1 %vm376_vm0, %v340_v44 }
  0xa4   : > { %1828 = vmatpush1.bf16.msra.mxu1 %v2669_v28  ;;  %471 = vmatprep.mubr.f32.mxu1 %v2410_v0 }
  0xa5   : > { %1830 = vmatprep.subr.bf16.mxu1 %v2671_v32  ;;  %1872 = vmatpush1.bf16.msra.mxu0 %v2694_v50 }
  0xa6   : > { %1874 = vmatprep.subr.bf16.mxu0 %v2667_v24 }
  0xa7   : > { %1743 = vmatmul.mubr.msk.f32.gmra.mrb[2].mxu1 %vm376_vm0, %v341_v49 }
  0xa8   : > { %477 = vmatprep.mubr.f32.mxu1 %v2410_v0  ;;  %1832 = vmatpush1.bf16.msra.mxu1 %v2676_v38 }
  0xa9   : > { %1834 = vmatprep.subr.bf16.mxu1 %v2678_v39 }
  0xab   : > { %1744 = vmatmul.mubr.msk.f32.gmra.mrb[4].mxu1 %vm376_vm0, %v342_v51 }
  0xac   : > { %483 = vmatprep.mubr.f32.mxu1 %v2410_v0  ;;  %1836 = vmatpush1.bf16.msra.mxu1 %v2683_v45 }
  0xad   : > { %1838 = vmatprep.subr.bf16.mxu1 %v2686_v46 }
  0xaf   : > { %1745 = vmatmul.mubr.msk.f32.gmra.mrb[6].mxu1 %vm376_vm0, %v343_v52 }
  0xb0   : > { %489 = vmatprep.mubr.f32.mxu1 %v2410_v0  ;;  %1840 = vmatpush1.bf16.msra.mxu1 %v2694_v50 }
  0xb1   : > { %1842 = vmatprep.subr.bf16.mxu1 %v2667_v24 }
  0xb3   : > { %1746 = vmatmul.mubr.msk.f32.gmra.mrb[8].mxu1 %vm376_vm0, %v344_v53 }
  0xb4   : > { %495 = vmatprep.mubr.f32.mxu1 %v2410_v0 }
  0xb7   : > { %1747 = vmatmul.mubr.msk.f32.gmra.mrb[10].mxu1 %vm376_vm0, %v345_v54 }
  0xb8   : > { %501 = vmatprep.mubr.f32.mxu1 %v2410_v0 }
  0xbb   : > { %1748 = vmatmul.mubr.msk.f32.gmra.mrb[12].mxu1 %vm376_vm0, %v346_v55 }
  0xbc   : > { %507 = vmatprep.mubr.f32.mxu1 %v2410_v0 }
  0xbf   : > { %1749 = vmatmul.mubr.msk.f32.gmra.mrb[14].mxu1 %vm376_vm0, %v347_v56 }
  0xc0   : > { %604 = vmatprep.mubr.f32.mxu1 %v2410_v0 }
  0xc3   : > { %605 = vmatmul.mubr.f32.vlgmr.msra.gmra.mrb[0].mxu1 %v2410_v0 }
  0xc4   : > { %1844 = vmatpush1.bf16.msra.mxu1 %v2669_v28  ;;  %725 = vmatprep.mubr.f32.mxu1 %v2410_v0 }
  0xc5   : > { %1846 = vmatprep.subr.bf16.mxu1 %v2671_v32 }
  0xc8   : > { %1848 = vmatpush1.bf16.msra.mxu1 %v2676_v38 }
  0xc9   : > { %1850 = vmatprep.subr.bf16.mxu1 %v2678_v39 }
  0xcc   : > { %1852 = vmatpush1.bf16.msra.mxu1 %v2683_v45 }
  0xcd   : > { %1854 = vmatprep.subr.bf16.mxu1 %v2686_v46 }
  0xd0   : > { %1856 = vmatpush1.bf16.msra.mxu1 %v2694_v50 }
 0x17e   : > { %v2734_v57 = vpop.f32.mrb[4].mxu1 }
 0x17f   : > { %v2736_v58 = vpop.f32.mrb[5].mxu1 }
 0x182   : > { %v2738_v59 = vpop.f32.mrb[6].mxu1 }
 0x183   : > { %v2740_v60 = vpop.f32.mrb[7].mxu1 }
 0x186   : > { %v2742_v61 = vpop.f32.mrb[8].mxu1 }
 0x187   : > { %v2744_v62 = vpop.f32.mrb[9].mxu1 }
 0x18a   : > { %v2746_v1 = vpop.f32.mrb[10].mxu1 }
 0x18b   : > { %v2748_v2 = vpop.f32.mrb[11].mxu1 }
 0x18e   : > { %v2750_v4 = vpop.f32.mrb[12].mxu1 }
 0x18f   : > { %v2752_v5 = vpop.f32.mrb[13].mxu1 }
 0x192   : > { %v2754_v7 = vpop.f32.mrb[14].mxu1 }
 0x193   : > { %v2759_v9 = vpop.f32.mrb[15].mxu1 }
 0x196   : > { %v606_v11 = vpop.f32.mrb[0].mxu1 }
 0x197   : > { %v608_v12 = vpop.f32.mrb[1].mxu1  ;;  %v1965_v17 = vadd.f32 %v606_v11, %v2765_v16 }
 0x198   : > { %v1966_v13 = vadd.f32 %v608_v12, %v2761_v10 }
 0x199   : > { %v1751_v18 = vmul.f32 -1.442695, %v1965_v17 }
 0x19a   : > { %2082 = vtanh.f32 %v1966_v13  ;;  %v1752_v30 = vmul.f32 -1.442695, %v1966_v13  ;;  %v480_v13 = vadd.f32 %v2734_v57, %v2765_v16 }
 0x19b   : > { %2084 = vpow2.f32 %v1751_v18 }
 0x1a4   : > { %v2083_v14 = vpop.eup %2082 }
 0x1a5   : > { %628 = vrot.lane.b32.xlu0 %v2083_v14, %s2411_s21  ;;  %v2085_v19 = vpop.eup %2084  ;;  %v482_v14 = vadd.f32 %v2736_v58, %v2761_v10 }
 0x1a6   : > { %v619_v20 = vadd.f32 1.0, %v2085_v19 }
 0x1a8   : > { %2086 = vrcp.f32 %v619_v20 }
 0x1b2   : > { %v2087_v21 = vpop.eup %2086 }
 0x1b3   : > { %v626_v25 = vmul.f32 0.0, %v2087_v21 }
 0x217   : > { %v629_v22 = vpop.permute.xlu0 %628 }
 0x218   : > { %v631_v23 = vmul.f32 %v2087_v21, %v629_v22 }
 0x21a   : > { %633 = vrot.lane.b32.xlu0 %v631_v23, %s2411_s21 }
 0x28c   : > { %v634_v26 = vpop.permute.xlu0 %633 }
 0x28d   : > { %v636_v27 = vadd.f32 %v634_v26, %v626_v25 }
 0x28f   : > { %2088 = vtanh.f32 %v636_v27 }
 0x290   : > { %2090 = vpow2.f32 %v1752_v30 }
 0x299   : > { %v2089_v29 = vpop.eup %2088 }
 0x29a   : > { %639 = vrot.lane.b32.xlu1 %v2089_v29, %s2411_s21  ;;  %v2091_v31 = vpop.eup %2090 }
 0x29b   : > { %v620_v33 = vadd.f32 1.0, %v2091_v31 }
 0x29d   : > { %2092 = vrcp.f32 %v620_v33 }
 0x2a7   : > { %v2093_v34 = vpop.eup %2092 }
 0x30c   : > { %v640_v35 = vpop.permute.xlu1 %639 }
 0x30d   : > { %v2770_v36 = vmul.f32 %v2093_v34, %v640_v35 }
 0x30f   : > { %1753 = vmatmul.mubr.msk.f32.vlgmr.msra.gmra.mrb[2].mxu1 %vm376_vm0, %v2770_v36 }
 0x310   : > { %1806 = vmatprep.mubr.msk.f32.mxu1 %vm2413_vm1, %v2410_v0 }
 0x3e2   : > { %v727_v37 = vpop.f32.mrb[2].mxu1 }
 0x3e3   : > { %v729_v40 = vpop.f32.mrb[3].mxu1  ;;  %v1967_v43 = vadd.f32 %v727_v37, %v2765_v16 }
 0x3e4   : > { %v1968_v41 = vadd.f32 %v729_v40, %v2761_v10 }
 0x3e5   : > { %v1754_v44 = vmul.f32 -1.442695, %v1967_v43 }
 0x3e6   : > { %2094 = vtanh.f32 %v1968_v41  ;;  %v1755_v63 = vmul.f32 -1.442695, %v1968_v41  ;;  %v486_v41 = vadd.f32 %v2738_v59, %v2765_v16 }
 0x3e7   : > { %2096 = vpow2.f32 %v1754_v44 }
 0x3f0   : > { %v2095_v42 = vpop.eup %2094 }
 0x3f1   : > { %749 = vrot.lane.b32.xlu1 %v2095_v42, %s2411_s21  ;;  %v2097_v47 = vpop.eup %2096  ;;  %v488_v42 = vadd.f32 %v2740_v60, %v2761_v10 }
 0x3f2   : > { %v740_v48 = vadd.f32 1.0, %v2097_v47 }
 0x3f4   : > { %2098 = vrcp.f32 %v740_v48 }
 0x3fe   : > { %v2099_v49 = vpop.eup %2098 }
 0x3ff   : > { %v747_v53 = vmul.f32 %v2099_v49, %v636_v27 }
 0x463   : > { %v750_v51 = vpop.permute.xlu1 %749 }
 0x464   : > { %v752_v52 = vmul.f32 %v2099_v49, %v750_v51 }
 0x466   : > { %754 = vrot.lane.b32.xlu0 %v752_v52, %s2411_s21 }
 0x4d8   : > { %v755_v54 = vpop.permute.xlu0 %754 }
 0x4d9   : > { %v757_v55 = vadd.f32 %v755_v54, %v747_v53 }
 0x4db   : > { %2100 = vtanh.f32 %v757_v55 }
 0x4dc   : > { %2102 = vpow2.f32 %v1755_v63 }
 0x4e5   : > { %v2101_v56 = vpop.eup %2100 }
 0x4e6   : > { %760 = vrot.lane.b32.xlu1 %v2101_v56, %s2411_s21  ;;  %v2103_v3 = vpop.eup %2102 }
 0x4e7   : > { %v741_v6 = vadd.f32 1.0, %v2103_v3 }
 0x4e9   : > { %2104 = vrcp.f32 %v741_v6 }
 0x4f3   : > { %v2105_v8 = vpop.eup %2104 }
 0x558   : > { %v761_v11 = vpop.permute.xlu1 %760 }
 0x559   : > { %v2779_v12 = vmul.f32 %v2105_v8, %v761_v11 }
 0x55b   : > { %1756 = vmatmul.mubr.msk.f32.vlgmr.msra.gmra.mrb[0].mxu0 %vm376_vm0, %v2779_v12 }
 0x55c   : > { %1876 = vmatpush1.bf16.msra.mxu0 %v2669_v28  ;;  %971 = vmatprep.mubr.f32.mxu0 %v2410_v0 }
 0x55d   : > { %1878 = vmatprep.subr.bf16.mxu0 %v2671_v32 }
 0x560   : > { %1880 = vmatpush1.bf16.msra.mxu0 %v2676_v38 }
 0x561   : > { %1882 = vmatprep.subr.bf16.mxu0 %v2678_v39 }
 0x564   : > { %1884 = vmatpush1.bf16.msra.mxu0 %v2683_v45 }
 0x565   : > { %1886 = vmatprep.subr.bf16.mxu0 %v2686_v46 }
 0x568   : > { %1888 = vmatpush1.bf16.msra.mxu0 %v2694_v50 }
 0x569   : > { %1890 = vmatprep.subr.bf16.mxu0 %v2667_v24 }
 0x62e   : > { %v850_v15 = vpop.f32.mrb[0].mxu0 }
 0x62f   : > { %v855_v17 = vadd.f32 %v850_v15, %v480_v13  ;;  %v852_v18 = vpop.f32.mrb[1].mxu0 }
 0x630   : > { %v856_v19 = vadd.f32 %v852_v18, %v482_v14  ;;  %v494_v18 = vadd.f32 %v2744_v62, %v2761_v10 }
 0x631   : > { %v1757_v21 = vmul.f32 -1.442695, %v855_v17  ;;  %v492_v17 = vadd.f32 %v2742_v61, %v2765_v16 }
 0x632   : > { %2106 = vtanh.f32 %v856_v19  ;;  %v1758_v31 = vmul.f32 -1.442695, %v856_v19 }
 0x633   : > { %2108 = vpow2.f32 %v1757_v21 }
 0x63c   : > { %v2107_v20 = vpop.eup %2106 }
 0x63d   : > { %872 = vrot.lane.b32.xlu0 %v2107_v20, %s2411_s21  ;;  %v2109_v22 = vpop.eup %2108 }
 0x63e   : > { %v863_v23 = vadd.f32 1.0, %v2109_v22 }
 0x640   : > { %2110 = vrcp.f32 %v863_v23 }
 0x64a   : > { %v2111_v25 = vpop.eup %2110 }
 0x64b   : > { %v870_v57 = vmul.f32 %v2111_v25, %v757_v55 }
 0x6af   : > { %v873_v26 = vpop.permute.xlu0 %872 }
 0x6b0   : > { %v875_v27 = vmul.f32 %v2111_v25, %v873_v26 }
 0x6b2   : > { %877 = vrot.lane.b32.xlu1 %v875_v27, %s2411_s21 }
 0x724   : > { %v878_v58 = vpop.permute.xlu1 %877 }
 0x725   : > { %v880_v29 = vadd.f32 %v878_v58, %v870_v57 }
 0x727   : > { %2112 = vtanh.f32 %v880_v29 }
 0x728   : > { %2114 = vpow2.f32 %v1758_v31 }
 0x731   : > { %v2113_v30 = vpop.eup %2112 }
 0x732   : > { %883 = vrot.lane.b32.xlu0 %v2113_v30, %s2411_s21  ;;  %v2115_v33 = vpop.eup %2114 }
 0x733   : > { %v864_v34 = vadd.f32 1.0, %v2115_v33 }
 0x735   : > { %2116 = vrcp.f32 %v864_v34 }
 0x73f   : > { %v2117_v35 = vpop.eup %2116 }
 0x7a4   : > { %v884_v37 = vpop.permute.xlu0 %883 }
 0x7a5   : > { %v2799_v40 = vmul.f32 %v2117_v35, %v884_v37 }
 0x7a7   : > { %1759 = vmatmul.mubr.msk.f32.vlgmr.msra.gmra.mrb[2].mxu0 %vm376_vm0, %v2799_v40 }
 0x7a8   : > { %1892 = vmatpush1.bf16.msra.mxu0 %v2669_v28  ;;  %1094 = vmatprep.mubr.f32.mxu0 %v2410_v0 }
 0x7a9   : > { %1894 = vmatprep.subr.bf16.mxu0 %v2671_v32 }
 0x7ac   : > { %1896 = vmatpush1.bf16.msra.mxu0 %v2676_v38 }
 0x7ad   : > { %1898 = vmatprep.subr.bf16.mxu0 %v2678_v39 }
 0x7b0   : > { %1900 = vmatpush1.bf16.msra.mxu0 %v2683_v45 }
 0x7b1   : > { %1902 = vmatprep.subr.bf16.mxu0 %v2686_v46 }
 0x7b4   : > { %1904 = vmatpush1.bf16.msra.mxu0 %v2694_v50 }
 0x7b5   : > { %1906 = vmatprep.subr.bf16.mxu0 %v2667_v24 }
 0x87a   : > { %v973_v43 = vpop.f32.mrb[2].mxu0 }
 0x87b   : > { %v978_v44 = vadd.f32 %v973_v43, %v486_v41  ;;  %v975_v47 = vpop.f32.mrb[3].mxu0  ;;  %v498_v43 = vadd.f32 %v2746_v1, %v2765_v16 }
 0x87c   : > { %v979_v48 = vadd.f32 %v975_v47, %v488_v42 }
 0x87d   : > { %v1760_v51 = vmul.f32 -1.442695, %v978_v44  ;;  %v500_v44 = vadd.f32 %v2748_v2, %v2761_v10 }
 0x87e   : > { %2118 = vtanh.f32 %v979_v48  ;;  %v1761_v6 = vmul.f32 -1.442695, %v979_v48 }
 0x87f   : > { %2120 = vpow2.f32 %v1760_v51 }
 0x888   : > { %v2119_v49 = vpop.eup %2118 }
 0x889   : > { %995 = vrot.lane.b32.xlu1 %v2119_v49, %s2411_s21  ;;  %v2121_v52 = vpop.eup %2120 }
 0x88a   : > { %v986_v53 = vadd.f32 1.0, %v2121_v52 }
 0x88c   : > { %2122 = vrcp.f32 %v986_v53 }
 0x896   : > { %v2123_v54 = vpop.eup %2122 }
 0x897   : > { %v993_v59 = vmul.f32 %v2123_v54, %v880_v29 }
 0x8fb   : > { %v996_v55 = vpop.permute.xlu1 %995 }
 0x8fc   : > { %v998_v56 = vmul.f32 %v2123_v54, %v996_v55 }
 0x8fe   : > { %1000 = vrot.lane.b32.xlu0 %v998_v56, %s2411_s21 }
 0x970   : > { %v1001_v60 = vpop.permute.xlu0 %1000 }
 0x971   : > { %v1003_v63 = vadd.f32 %v1001_v60, %v993_v59 }
 0x973   : > { %2124 = vtanh.f32 %v1003_v63 }
 0x974   : > { %2126 = vpow2.f32 %v1761_v6 }
 0x97d   : > { %v2125_v3 = vpop.eup %2124 }
 0x97e   : > { %1006 = vrot.lane.b32.xlu1 %v2125_v3, %s2411_s21  ;;  %v2127_v8 = vpop.eup %2126 }
 0x97f   : > { %v987_v11 = vadd.f32 1.0, %v2127_v8 }
 0x981   : > { %2128 = vrcp.f32 %v987_v11 }
 0x98b   : > { %v2129_v13 = vpop.eup %2128 }
 0x9f0   : > { %v1007_v14 = vpop.permute.xlu1 %1006 }
 0x9f1   : > { %v2819_v15 = vmul.f32 %v2129_v13, %v1007_v14 }
 0x9f3   : > { %1762 = vmatmul.mubr.msk.f32.vlgmr.msra.gmra.mrb[4].mxu0 %vm376_vm0, %v2819_v15 }
 0x9f4   : > { %1908 = vmatpush1.bf16.msra.mxu0 %v2669_v28  ;;  %1217 = vmatprep.mubr.f32.mxu0 %v2410_v0 }
 0x9f5   : > { %1910 = vmatprep.subr.bf16.mxu0 %v2671_v32 }
 0x9f8   : > { %1912 = vmatpush1.bf16.msra.mxu0 %v2676_v38 }
 0x9f9   : > { %1914 = vmatprep.subr.bf16.mxu0 %v2678_v39 }
 0x9fc   : > { %1916 = vmatpush1.bf16.msra.mxu0 %v2683_v45 }
 0x9fd   : > { %1918 = vmatprep.subr.bf16.mxu0 %v2686_v46 }
 0xa00   : > { %1920 = vmatpush1.bf16.msra.mxu0 %v2694_v50 }
 0xa01   : > { %1922 = vmatprep.subr.bf16.mxu0 %v2667_v24 }
 0xac6   : > { %v1096_v19 = vpop.f32.mrb[4].mxu0 }
 0xac7   : > { %v1101_v20 = vadd.f32 %v1096_v19, %v492_v17  ;;  %v1098_v21 = vpop.f32.mrb[5].mxu0  ;;  %v504_v17 = vadd.f32 %v2750_v4, %v2765_v16 }
 0xac8   : > { %v1102_v22 = vadd.f32 %v1098_v21, %v494_v18 }
 0xac9   : > { %v1763_v25 = vmul.f32 -1.442695, %v1101_v20 }
 0xaca   : > { %2130 = vtanh.f32 %v1102_v22  ;;  %v1764_v33 = vmul.f32 -1.442695, %v1102_v22 }
 0xacb   : > { %2132 = vpow2.f32 %v1763_v25 }
 0xad4   : > { %v2131_v23 = vpop.eup %2130 }
 0xad5   : > { %1118 = vrot.lane.b32.xlu0 %v2131_v23, %s2411_s21  ;;  %v2133_v26 = vpop.eup %2132 }
 0xad6   : > { %v1109_v27 = vadd.f32 1.0, %v2133_v26 }
 0xad8   : > { %2134 = vrcp.f32 %v1109_v27 }
 0xae2   : > { %v2135_v57 = vpop.eup %2134 }
 0xae3   : > { %v1116_v61 = vmul.f32 %v2135_v57, %v1003_v63 }
 0xb47   : > { %v1119_v58 = vpop.permute.xlu0 %1118 }
 0xb48   : > { %v1121_v29 = vmul.f32 %v2135_v57, %v1119_v58 }
 0xb4a   : > { %1123 = vrot.lane.b32.xlu1 %v1121_v29, %s2411_s21 }
 0xbbc   : > { %v1124_v62 = vpop.permute.xlu1 %1123 }
 0xbbd   : > { %v1126_v30 = vadd.f32 %v1124_v62, %v1116_v61  ;;  %v510_v62 = vadd.f32 %v2754_v7, %v2765_v16  ;;  %v643_v7 = vmax.f32 %v2770_v36, 0.0 }
 0xbbf   : > { %2136 = vtanh.f32 %v1126_v30 }
 0xbc0   : > { %2138 = vpow2.f32 %v1764_v33 }
 0xbc9   : > { %v2137_v31 = vpop.eup %2136 }
 0xbca   : > { %1129 = vrot.lane.b32.xlu0 %v2137_v31, %s2411_s21  ;;  %v2139_v34 = vpop.eup %2138 }
 0xbcb   : > { %v1110_v35 = vadd.f32 1.0, %v2139_v34 }
 0xbcd   : > { %2140 = vrcp.f32 %v1110_v35 }
 0xbd7   : > { %v2141_v37 = vpop.eup %2140 }
 0xc3c   : > { %v1130_v41 = vpop.permute.xlu0 %1129 }
 0xc3d   : > { %v2839_v42 = vmul.f32 %v2141_v37, %v1130_v41 }
 0xc3f   : > { %1765 = vmatmul.mubr.msk.f32.vlgmr.msra.gmra.mrb[6].mxu0 %vm376_vm0, %v2839_v42 }
 0xc40   : > { %1924 = vmatpush1.bf16.msra.mxu0 %v2669_v28  ;;  %1340 = vmatprep.mubr.f32.mxu0 %v2410_v0 }
 0xc41   : > { %1926 = vmatprep.subr.bf16.mxu0 %v2671_v32 }
 0xc44   : > { %1928 = vmatpush1.bf16.msra.mxu0 %v2676_v38 }
 0xc45   : > { %1930 = vmatprep.subr.bf16.mxu0 %v2678_v39 }
 0xc48   : > { %1932 = vmatpush1.bf16.msra.mxu0 %v2683_v45 }
 0xc49   : > { %1934 = vmatprep.subr.bf16.mxu0 %v2686_v46 }
 0xc4c   : > { %1936 = vmatpush1.bf16.msra.mxu0 %v2694_v50 }
 0xc4d   : > { %1938 = vmatprep.subr.bf16.mxu0 %v2667_v24 }
 0xd12   : > { %v1219_v47 = vpop.f32.mrb[6].mxu0 }
 0xd13   : > { %v1224_v48 = vadd.f32 %v1219_v47, %v498_v43  ;;  %v1221_v49 = vpop.f32.mrb[7].mxu0 }
 0xd14   : > { %v1225_v51 = vadd.f32 %v1221_v49, %v500_v44 }
 0xd15   : > { %v1766_v53 = vmul.f32 -1.442695, %v1224_v48 }
 0xd16   : > { %2142 = vtanh.f32 %v1225_v51  ;;  %v1767_v3 = vmul.f32 -1.442695, %v1225_v51  ;;  %v1010_v51 = vmax.f32 %v2819_v15, 0.0 }
 0xd17   : > { %2144 = vpow2.f32 %v1766_v53 }
 0xd20   : > { %v2143_v52 = vpop.eup %2142 }
 0xd21   : > { %1241 = vrot.lane.b32.xlu1 %v2143_v52, %s2411_s21  ;;  %v2145_v54 = vpop.eup %2144 }
 0xd22   : > { %v1232_v55 = vadd.f32 1.0, %v2145_v54 }
 0xd24   : > { %2146 = vrcp.f32 %v1232_v55 }
 0xd2e   : > { %v2147_v24 = vpop.eup %2146 }
 0xd2f   : > { %v1239_v1 = vmul.f32 %v2147_v24, %v1126_v30  ;;  %v512_v30 = vadd.f32 %v2759_v9, %v2761_v10  ;;  %v1750_v9 = vld [vmem:[%s3000_s4] ss:$0 sm:$0xff] }
 0xd30   : > { %v644_v16 = vmul.f32 %v1750_v9, %v643_v7 }
 0xd32   : > { %v645_v52 = vsel %vm376_vm0, %v644_v16, 0.0 }
 0xd93   : > { %v1242_v56 = vpop.permute.xlu1 %1241 }
 0xd94   : > { %v1244_v59 = vmul.f32 %v2147_v24, %v1242_v56  ;;  %v1011_v24 = vmul.f32 %v1750_v9, %v1010_v51 }
 0xd96   : > { %1246 = vrot.lane.b32.xlu0 %v1244_v59, %s2411_s21  ;;  %v1012_v56 = vsel %vm376_vm0, %v1011_v24, 0.0 }
 0xe08   : > { %v1247_v2 = vpop.permute.xlu0 %1246 }
 0xe09   : > { %v1249_v60 = vadd.f32 %v1247_v2, %v1239_v1 }
 0xe0b   : > { %2148 = vtanh.f32 %v1249_v60 }
 0xe0c   : > { %2150 = vpow2.f32 %v1767_v3 }
 0xe15   : > { %v2149_v63 = vpop.eup %2148 }
 0xe16   : > { %1252 = vrot.lane.b32.xlu1 %v2149_v63, %s2411_s21  ;;  %v2151_v6 = vpop.eup %2150 }
 0xe17   : > { %v1233_v8 = vadd.f32 1.0, %v2151_v6  ;;  %v764_v6 = vmax.f32 %v2779_v12, 0.0 }
 0xe19   : > { %2152 = vrcp.f32 %v1233_v8  ;;  %v1133_v8 = vmax.f32 %v2839_v42, 0.0 }
 0xe23   : > { %v2153_v11 = vpop.eup %2152 }
 0xe88   : > { %v1253_v13 = vpop.permute.xlu1 %1252 }
 0xe89   : > { %v2859_v14 = vmul.f32 %v2153_v11, %v1253_v13  ;;  %v765_v11 = vmul.f32 %v1750_v9, %v764_v6 }
 0xe8b   : > { %1768 = vmatmul.mubr.msk.f32.vlgmr.msra.gmra.mrb[8].mxu0 %vm376_vm0, %v2859_v14  ;;  %v1256_v54 = vmax.f32 %v2859_v14, 0.0 }
 0xe8c   : > { %1940 = vmatpush1.bf16.msra.mxu0 %v2669_v28  ;;  %1463 = vmatprep.mubr.f32.mxu0 %v2410_v0  ;;  %v506_v28 = vadd.f32 %v2752_v5, %v2761_v10  ;;  %v887_v10 = vmax.f32 %v2799_v40, 0.0 }
 0xe8d   : > { %1942 = vmatprep.subr.bf16.mxu0 %v2671_v32  ;;  %v1257_v59 = vmul.f32 %v1750_v9, %v1256_v54 }
 0xe8e   : > { %v888_v53 = vmul.f32 %v1750_v9, %v887_v10 }
 0xe8f   : > { %v1258_v1 = vsel %vm376_vm0, %v1257_v59, 0.0 }
 0xe90   : > { %1944 = vmatpush1.bf16.msra.mxu0 %v2676_v38  ;;  %v889_v55 = vsel %vm376_vm0, %v888_v53, 0.0 }
 0xe91   : > { %1946 = vmatprep.subr.bf16.mxu0 %v2678_v39 }
 0xe94   : > { %1948 = vmatpush1.bf16.msra.mxu0 %v2683_v45 }
 0xe95   : > { %1950 = vmatprep.subr.bf16.mxu0 %v2686_v46 }
 0xe98   : > { %1952 = vmatpush1.bf16.msra.mxu0 %v2694_v50 }
 0xf5e   : > { %v1342_v18 = vpop.f32.mrb[8].mxu0 }
 0xf5f   : > { %v1347_v19 = vadd.f32 %v1342_v18, %v504_v17  ;;  %v1344_v20 = vpop.f32.mrb[9].mxu0  ;;  %v766_v17 = vsel %vm376_vm0, %v765_v11, 0.0 }
 0xf60   : > { %v1348_v32 = vadd.f32 %v1344_v20, %v506_v28  ;;  %v1134_v28 = vmul.f32 %v1750_v9, %v1133_v8 }
 0xf61   : > { %v1769_v39 = vmul.f32 -1.442695, %v1347_v19 }
 0xf62   : > { %2154 = vtanh.f32 %v1348_v32  ;;  %v1770_v26 = vmul.f32 -1.442695, %v1348_v32  ;;  %v1135_v18 = vsel %vm376_vm0, %v1134_v28, 0.0 }
 0xf63   : > { %2156 = vpow2.f32 %v1769_v39 }
 0xf6c   : > { %v2155_v38 = vpop.eup %2154 }
 0xf6d   : > { %1364 = vrot.lane.b32.xlu0 %v2155_v38, %s2411_s21  ;;  %v2157_v45 = vpop.eup %2156 }
 0xf6e   : > { %v1355_v46 = vadd.f32 1.0, %v2157_v45 }
 0xf70   : > { %2158 = vrcp.f32 %v1355_v46 }
 0xf7a   : > { %v2159_v50 = vpop.eup %2158 }
 0xf7b   : > { %v1362_v4 = vmul.f32 %v2159_v50, %v1249_v60 }
 0xfdf   : > { %v1365_v21 = vpop.permute.xlu0 %1364 }
 0xfe0   : > { %v1367_v22 = vmul.f32 %v2159_v50, %v1365_v21 }
 0xfe2   : > { %1369 = vrot.lane.b32.xlu1 %v1367_v22, %s2411_s21 }
0x1054   : > { %v1370_v5 = vpop.permute.xlu1 %1369 }
0x1055   : > { %v1372_v23 = vadd.f32 %v1370_v5, %v1362_v4  ;;  %v1524_v5 = vld [vmem:[#allocation8] sm:$0xff] }
0x1057   : > { %2160 = vtanh.f32 %v1372_v23 }
0x1058   : > { %2162 = vpow2.f32 %v1770_v26  ;;  %v2412_v26 = vmov 0.0|0.0  }
0x1059   : > { %1953 = vmatprep.subr.bf16.mxu1 %v2412_v26 }
0x1061   : > { %v2161_v25 = vpop.eup %2160 }
0x1062   : > { %1375 = vrot.lane.b32.xlu0 %v2161_v25, %s2411_s21  ;;  %v2163_v27 = vpop.eup %2162 }
0x1063   : > { %v1356_v57 = vadd.f32 1.0, %v2163_v27  ;;  %v1526_v27 = vld [vmem:[#allocation8 + $0x10] sm:$0xff] }
0x1065   : > { %2164 = vrcp.f32 %v1356_v57  ;;  %v1527_v57 = vld [vmem:[#allocation8 + $0x18] sm:$0xff] }
0x106f   : > { %v2165_v58 = vpop.eup %2164 }
0x10d4   : > { %v1376_v29 = vpop.permute.xlu0 %1375 }
0x10d5   : > { %v2878_v61 = vmul.f32 %v2165_v58, %v1376_v29  ;;  %v1957_v58 = vpack.c.bf16 %v1527_v57, %v1526_v27  ;;  %v1528_v29 = vld [vmem:[#allocation8 + $0x20] sm:$0xff] }
0x10d7   : > { %1771 = vmatmul.mubr.msk.f32.vlgmr.msra.gmra.mrb[10].mxu0 %vm376_vm0, %v2878_v61  ;;  %v1379_v13 = vmax.f32 %v2878_v61, 0.0  ;;  %v1774_v61 = vld [vmem:[%s3002_s6] ss:$0 sm:$0xff] }
0x10d9   : > { %v1380_v19 = vmul.f32 %v1750_v9, %v1379_v13 }
0x10db   : > { %v1381_v20 = vsel %vm376_vm0, %v1380_v19, 0.0 }
0x11aa   : > { %v1465_v31 = vpop.f32.mrb[10].mxu0 }
0x11ab   : > { %v1470_v33 = vadd.f32 %v1465_v31, %v510_v62  ;;  %v1467_v34 = vpop.f32.mrb[11].mxu0  ;;  %v1529_v62 = vld [vmem:[#allocation8 + $0x28] sm:$0xff] }
0x11ac   : > { %v1471_v35 = vadd.f32 %v1467_v34, %v512_v30  ;;  %v1530_v30 = vld [vmem:[#allocation8 + $0x30] sm:$0xff]  ;;  %v1960_v31 = vpack.c.bf16 %v1529_v62, %v1528_v29 }
0x11ad   : > { %v1772_v41 = vmul.f32 -1.442695, %v1470_v33  ;;  %v1531_v33 = vld [vmem:[#allocation8 + $0x38] sm:$0xff] }
0x11ae   : > { %2166 = vtanh.f32 %v1471_v35  ;;  %v1773_v32 = vmul.f32 -1.442695, %v1471_v35  ;;  %v1963_v34 = vpack.c.bf16 %v1531_v33, %v1530_v30 }
0x11af   : > { %2168 = vpow2.f32 %v1772_v41 }
0x11b8   : > { %v2167_v37 = vpop.eup %2166 }
0x11b9   : > { %1487 = vrot.lane.b32.xlu1 %v2167_v37, %s2411_s21  ;;  %v2169_v43 = vpop.eup %2168 }
0x11ba   : > { %v1478_v44 = vadd.f32 1.0, %v2169_v43 }
0x11bc   : > { %2170 = vrcp.f32 %v1478_v44 }
0x11c6   : > { %v2171_v47 = vpop.eup %2170 }
0x11c7   : > { %v1485_v2 = vmul.f32 %v2171_v47, %v1372_v23  ;;  %v1525_v23 = vld [vmem:[#allocation8 + $0x8] sm:$0xff] }
0x11c8   : > { %v1954_v25 = vpack.c.bf16 %v1525_v23, %v1524_v5 }
0x11ca   : > { %1955 = vmatpush3.bf16.msra.mxu1 %v1954_v25 }
0x11cb   : > { %1956 = vmatprep.subr.bf16.mxu1 %v2412_v26 }
0x11ce   : > { %1958 = vmatpush3.bf16.msra.mxu1 %v1957_v58 }
0x11cf   : > { %1959 = vmatprep.subr.bf16.mxu1 %v2412_v26 }
0x11d2   : > { %1961 = vmatpush3.bf16.msra.mxu1 %v1960_v31 }
0x11d3   : > { %1962 = vmatprep.subr.bf16.mxu1 %v2412_v26 }
0x11d6   : > { %1964 = vmatpush3.bf16.msra.mxu1 %v1963_v34 }
0x122b   : > { %v1488_v48 = vpop.permute.xlu1 %1487 }
0x122c   : > { %v1490_v49 = vmul.f32 %v2171_v47, %v1488_v48 }
0x122e   : > { %1492 = vrot.lane.b32.xlu0 %v1490_v49, %s2411_s21 }
0x124d   : > { %646 = vadd.xlane.f32.xlu0 %v645_v52 }
0x1251   : > { %890 = vadd.xlane.f32.xlu0 %v889_v55 }
0x1255   : > { %1013 = vadd.xlane.f32.xlu0 %v1012_v56 }
0x1259   : > { %1259 = vadd.xlane.f32.xlu0 %v1258_v1 }
0x12a0   : > { %v1493_v60 = vpop.permute.xlu0 %1492 }
0x12a1   : > { %v1495_v63 = vadd.f32 %v1493_v60, %v1485_v2 }
0x12a3   : > { %2172 = vtanh.f32 %v1495_v63 }
0x12a4   : > { %2174 = vpow2.f32 %v1773_v32 }
0x12ad   : > { %v2173_v3 = vpop.eup %2172 }
0x12ae   : > { %1498 = vrot.lane.b32.xlu1 %v2173_v3, %s2411_s21  ;;  %v2175_v38 = vpop.eup %2174 }
0x12af   : > { %v1479_v39 = vadd.f32 1.0, %v2175_v38 }
0x12b1   : > { %2176 = vrcp.f32 %v1479_v39 }
0x12bb   : > { %v2177_v45 = vpop.eup %2176 }
0x12d2   : > { %767 = vadd.xlane.f32.xlu1 %v766_v17 }
0x12d6   : > { %1136 = vadd.xlane.f32.xlu1 %v1135_v18 }
0x12da   : > { %1382 = vadd.xlane.f32.xlu1 %v1381_v20  ;;  %v647_v35 = vpop.xlane.xlu0 %646 }
0x12db   : > { %v648_v41 = vsub.f32 -inf, %v647_v35  ;;  %v651_v47 = vsub.f32 %v647_v35, %v647_v35 }
0x12dd   : > { %v649_v44 = vmul.f32 1.442695, %v648_v41  ;;  %v652_v49 = vmul.f32 1.442695, %v651_v47 }
0x12de   : > { %v891_v16 = vpop.xlane.xlu0 %890 }
0x12df   : > { %2178 = vpow2.f32 %v649_v44 }
0x12e0   : > { %2180 = vpow2.f32 %v652_v49 }
0x12e2   : > { %v1014_v56 = vpop.xlane.xlu0 %1013 }
0x12e6   : > { %v1260_v23 = vpop.xlane.xlu0 %1259 }
0x12e9   : > { %v2179_v24 = vpop.eup %2178 }
0x12ea   : > { %v654_v60 = vmul.f32 0.0, %v2179_v24  ;;  %v2181_v63 = vpop.eup %2180 }
0x12eb   : > { %v656_v5 = vmul.f32 %v2181_v63, %v643_v7 }
0x12ec   : > { %v655_v28 = vadd.f32 %v2181_v63, %v654_v60 }
0x12ed   : > { %v657_v62 = vadd.f32 %v656_v5, %v654_v60 }
0x1320   : > { %v1499_v46 = vpop.permute.xlu1 %1498 }
0x1321   : > { %v2920_v50 = vmul.f32 %v2177_v45, %v1499_v46 }
0x1323   : > { %v1502_v21 = vmax.f32 %v2920_v50, 0.0 }
0x1325   : > { %v1503_v22 = vmul.f32 %v1750_v9, %v1502_v21 }
0x1327   : > { %v1504_v4 = vsel %vm376_vm0, %v1503_v22, 0.0 }
0x1328   : > { %1505 = vadd.xlane.f32.xlu0 %v1504_v4 }
0x135f   : > { %v768_v37 = vpop.xlane.xlu1 %767 }
0x1360   : > { %v769_v43 = vmax.f32 %v647_v35, %v768_v37 }
0x1362   : > { %v770_v48 = vsub.f32 %v647_v35, %v769_v43  ;;  %v773_v52 = vsub.f32 %v768_v37, %v769_v43  ;;  %v892_v53 = vmax.f32 %v769_v43, %v891_v16 }
0x1363   : > { %v1137_v19 = vpop.xlane.xlu1 %1136 }
0x1364   : > { %v771_v9 = vmul.f32 1.442695, %v770_v48  ;;  %v774_v0 = vmul.f32 1.442695, %v773_v52  ;;  %v893_v55 = vsub.f32 %v769_v43, %v892_v53  ;;  %v896_v1 = vsub.f32 %v891_v16, %v892_v53 }
0x1365   : > { %v1015_v2 = vmax.f32 %v892_v53, %v1014_v56 }
0x1366   : > { %2182 = vpow2.f32 %v771_v9  ;;  %v894_v59 = vmul.f32 1.442695, %v893_v55  ;;  %v897_v11 = vmul.f32 1.442695, %v896_v1 }
0x1367   : > { %2184 = vpow2.f32 %v774_v0  ;;  %v1016_v17 = vsub.f32 %v892_v53, %v1015_v2  ;;  %v1019_v32 = vsub.f32 %v1014_v56, %v1015_v2  ;;  %v1138_v38 = vmax.f32 %v1015_v2, %v1137_v19  ;;  %v1383_v36 = vpop.xlane.xlu1 %1382 }
0x1368   : > { %2186 = vpow2.f32 %v894_v59 }
0x1369   : > { %2188 = vpow2.f32 %v897_v11  ;;  %v1017_v20 = vmul.f32 1.442695, %v1016_v17  ;;  %v1020_v46 = vmul.f32 1.442695, %v1019_v32  ;;  %v1139_v22 = vsub.f32 %v1015_v2, %v1138_v38 }
0x136a   : > { %v1142_v27 = vsub.f32 %v1137_v19, %v1138_v38  ;;  %v1261_v57 = vmax.f32 %v1138_v38, %v1260_v23 }
0x136b   : > { %2190 = vpow2.f32 %v1017_v20  ;;  %v1140_v26 = vmul.f32 1.442695, %v1139_v22 }
0x136c   : > { %2192 = vpow2.f32 %v1020_v46  ;;  %v1143_v30 = vmul.f32 1.442695, %v1142_v27  ;;  %v1262_v31 = vsub.f32 %v1138_v38, %v1261_v57  ;;  %v1265_v41 = vsub.f32 %v1260_v23, %v1261_v57 }
0x136d   : > { %2194 = vpow2.f32 %v1140_v26  ;;  %v1384_v43 = vmax.f32 %v1261_v57, %v1383_v36 }
0x136e   : > { %2196 = vpow2.f32 %v1143_v30  ;;  %v1263_v7 = vmul.f32 1.442695, %v1262_v31  ;;  %v1266_v49 = vmul.f32 1.442695, %v1265_v41 }
0x136f   : > { %v1385_v9 = vsub.f32 %v1261_v57, %v1384_v43 }
0x1370   : > { %v2183_v3 = vpop.eup %2182  ;;  %2198 = vpow2.f32 %v1263_v7 }
0x1371   : > { %v776_v18 = vmul.f32 %v2183_v3, %v655_v28  ;;  %v2185_v39 = vpop.eup %2184  ;;  %v778_v34 = vmul.f32 %v2183_v3, %v657_v62  ;;  %2200 = vpow2.f32 %v1266_v49  ;;  %v1386_v12 = vmul.f32 1.442695, %v1385_v9 }
0x1372   : > { %v2187_v4 = vpop.eup %2186  ;;  %v779_v35 = vmul.f32 %v2185_v39, %v764_v6  ;;  %v1388_v6 = vsub.f32 %v1383_v36, %v1384_v43 }
0x1373   : > { %v777_v45 = vadd.f32 %v2185_v39, %v776_v18  ;;  %v2189_v58 = vpop.eup %2188  ;;  %2202 = vpow2.f32 %v1386_v12 }
0x1374   : > { %v780_v47 = vadd.f32 %v779_v35, %v778_v34  ;;  %v902_v0 = vmul.f32 %v2189_v58, %v887_v10  ;;  %v1389_v1 = vmul.f32 1.442695, %v1388_v6 }
0x1375   : > { %v899_v25 = vmul.f32 %v2187_v4, %v777_v45  ;;  %v2191_v33 = vpop.eup %2190 }
0x1376   : > { %v2193_v44 = vpop.eup %2192  ;;  %v901_v52 = vmul.f32 %v2187_v4, %v780_v47  ;;  %2204 = vpow2.f32 %v1389_v1 }
0x1377   : > { %v900_v29 = vadd.f32 %v2189_v58, %v899_v25  ;;  %v2195_v16 = vpop.eup %2194  ;;  %v1025_v28 = vmul.f32 %v2193_v44, %v1010_v51 }
0x1378   : > { %v2197_v55 = vpop.eup %2196  ;;  %v903_v24 = vadd.f32 %v902_v0, %v901_v52 }
0x1379   : > { %v1022_v37 = vmul.f32 %v2191_v33, %v900_v29  ;;  %v1148_v45 = vmul.f32 %v2197_v55, %v1133_v8 }
0x137a   : > { %v2199_v60 = vpop.eup %2198  ;;  %v1024_v63 = vmul.f32 %v2191_v33, %v903_v24 }
0x137b   : > { %v1023_v48 = vadd.f32 %v2193_v44, %v1022_v37  ;;  %v2201_v18 = vpop.eup %2200 }
0x137c   : > { %v1026_v19 = vadd.f32 %v1025_v28, %v1024_v63  ;;  %v1271_v26 = vmul.f32 %v2201_v18, %v1256_v54 }
0x137d   : > { %v1145_v53 = vmul.f32 %v2195_v16, %v1023_v48  ;;  %v2203_v32 = vpop.eup %2202 }
0x137e   : > { %v1147_v38 = vmul.f32 %v2195_v16, %v1026_v19 }
0x137f   : > { %v1146_v56 = vadd.f32 %v2197_v55, %v1145_v53 }
0x1380   : > { %v2205_v46 = vpop.eup %2204  ;;  %v1149_v22 = vadd.f32 %v1148_v45, %v1147_v38 }
0x1381   : > { %v1268_v17 = vmul.f32 %v2199_v60, %v1146_v56  ;;  %v1394_v42 = vmul.f32 %v2205_v46, %v1379_v13 }
0x1382   : > { %v1270_v23 = vmul.f32 %v2199_v60, %v1149_v22 }
0x1383   : > { %v1269_v20 = vadd.f32 %v2201_v18, %v1268_v17 }
0x1384   : > { %v1272_v27 = vadd.f32 %v1271_v26, %v1270_v23 }
0x1385   : > { %v1391_v39 = vmul.f32 %v2203_v32, %v1269_v20 }
0x1386   : > { %v1393_v57 = vmul.f32 %v2203_v32, %v1272_v27 }
0x1387   : > { %v1392_v4 = vadd.f32 %v2205_v46, %v1391_v39 }
0x1388   : > { %v1395_v8 = vadd.f32 %v1394_v42, %v1393_v57 }
0x13b5   : > { %v1506_v59 = vpop.xlane.xlu0 %1505 }
0x13b6   : > { %v1507_v2 = vmax.f32 %v1384_v43, %v1506_v59 }
0x13b8   : > { %v1508_v3 = vsub.f32 %v1384_v43, %v1507_v2  ;;  %v1511_v11 = vsub.f32 %v1506_v59, %v1507_v2 }
0x13ba   : > { %v1509_v40 = vmul.f32 1.442695, %v1508_v3  ;;  %v1512_v10 = vmul.f32 1.442695, %v1511_v11 }
0x13bc   : > { %2206 = vpow2.f32 %v1509_v40 }
0x13bd   : > { %2208 = vpow2.f32 %v1512_v10 }
0x13c6   : > { %v2207_v5 = vpop.eup %2206 }
0x13c7   : > { %v1514_v15 = vmul.f32 %v2207_v5, %v1392_v4  ;;  %v2209_v51 = vpop.eup %2208  ;;  %v1516_v29 = vmul.f32 %v2207_v5, %v1395_v8 }
0x13c8   : > { %v1517_v62 = vmul.f32 %v2209_v51, %v1502_v21 }
0x13c9   : > { %v1515_v25 = vadd.f32 %v2209_v51, %v1514_v15 }
0x13ca   : > { %v1518_v33 = vadd.f32 %v1517_v62, %v1516_v29 }
0x13cb   : > { %2210 = vrcp.f32 %v1515_v25 }
0x13d5   : > { %v2211_v58 = vpop.eup %2210 }
0x13d6   : > { %v1520_v30 = vmul.f32 %v2211_v58, %v1515_v25 }
0x13d8   : > { %v1521_v31 = vsub.f32 2.0, %v1520_v30 }
0x13da   : > { %v1522_v14 = vmul.f32 %v2211_v58, %v1521_v31 }
0x13dc   : > { %v1523_v34 = vmul.f32 %v1522_v14, %v1518_v33 }
0x13de   : > { %1807 = vmatmul.mubr.msk.f32.vlgmr.msra.gmra.mrb[16].mxu1 %vm376_vm0, %v1523_v34 }
0x14b1   : > { %v1608_v54 = vpop.f32.mrb[16].mxu1 }
0x14b2   : > { %v1609_v13 = vadd.f32 %v1774_v61, %v1608_v54  ;;  %v1808_v50 = vpop.f32.mrb[17].mxu1 }
0x14b4   : > { %v1776_v21 = vclamps-f32 %v1609_v13, 0.003 }
0x14b6   : > { %1614 = vst [vmem:[%s339_s14] sm:$0xff] %v1776_v21 }
0x14b7   : > { %2339 = shalt.err (!%p2336_p12)
}
0x14b8   : > { %s2340_s20 = scalar_lea.hbm %s2952_s19, 128  ;;  %s2344_s21 = scalar_lea.hbm %s3003_s7, 256 }
0x14b9   : > { %p2341_p3 = scmp.ne.s32.totalorder %s2952_s19, %s2340_s20  ;;  %p2345_p13 = scmp.lt.u32.totalorder %s2952_s19, %s3003_s7 }
0x14ba   : > { %p2346_p7 = scmp.lt.u32.totalorder %s2344_s21, %s2340_s20  ;;  %p2348_p10 = scmp.lt.u32.totalorder %s2340_s20, %s2952_s19 }
0x14bb   : > { %p2342_p6 = pnand %p2341_p3, %p3036_p1 }
0x14bc   : > { %p2347_p9 = por %p2346_p7, %p2345_p13 }
0x14bd   : > { %p2343_p8 = pneg %p2342_p6 }
0x14be   : > { %p2349_p4 = por %p2348_p10, %p2347_p9 }
0x14c0   : > { %p2350_p0 = pnand %p2349_p4, %p2343_p8 }
0x14c2   : > { %2353 = shalt.err (!%p2350_p0)
}
0x14c3   : > { %2011 = dma.vmem_to_hbm [thread:$0]  (%p3036_p1), %s2954_s16, 128, %s2952_s19, %s1616_s18  }
0x14c4 PF: > { %s3037_s1 = sld [smem:[#allocation15_spill]]  ;;  %s3038_s22 = sld [smem:[#allocation18_spill]] }
0x14c5   : > { %p3040_p5 = scmp.ge.s32.totalorder %s2400_s27, 2 }
0x14ca   : > { %s1641_s17 = sand.u32 1, %s3037_s1   ;;  %p3039_p2 = scmp.ne.s32.totalorder %s3038_s22, 0 }
0x14cb   : > { %s1642_s11 = scalar_lea.sflag [#allocation4], %s1641_s17 }
0x14cc   : > { %p2028_p11 = pnand %p3040_p5, %p3039_p2 }
0x14ce   : > { %2383 = dma.done.wait (!%p2028_p11), %s1642_s11, 128  }
0x14cf   : > { %2385 = vsyncadd (!%p2028_p11), %s1642_s11, 4294967168  ;;  %s3041_s27 = sld [smem:[#allocation16_spill]]  ;;  %s3042_s14 = sld [smem:[#allocation17_spill]] }
0x14d0   : > { %s3043_s24 = smov %s2392_s25  ;;  %s3044_s25 = smov %s2396_s26 }
0x14d5   : > { %p22_p12 = scmp.ge.s32.totalorder %s3041_s27, 4   ;;  %s3045_s26 = smov %s3042_s14 }
0x14d7   :  { %24 = sbr.rel (!%p22_p12) target bundleno = 9 (0x9), region = 105 }
0x14de   :  { %1647 = vsyncpa [#allocation3], 1 }
0x14df   :  { %1649 = vsyncpa [#allocation3 + $0x1], 1 }
0x14e0   :  { %1650 = vsyncpa [#allocation6], 1 }
0x14e1   :  { %1651 = vsyncpa [#allocation9], 1 }
0x14e2   :  { %1652 = vsyncpa [#allocation4], 1 }
0x14e3   :  { %1654 = vsyncpa [#allocation4 + $0x1], 1 }

</bundles_post_ra>
